<compile_context>
chip_gen: v7x
topology: tpu7x:2x2x1
jax: 0.10.0
libtpu: 0.0.40
codegen_flags: <defaults>
</compile_context>

<pallas_src>
import functools

import jax
import jax.numpy as jnp
from jax import lax
from jax.experimental import pallas as pl
from jax.experimental.pallas import tpu as pltpu


# ----------------------------------------------------------------------------
# Pallas kernel
# ----------------------------------------------------------------------------
def _layer_norm(z, g, b, eps):
    mu = jnp.mean(z, axis=-1, keepdims=True)
    var = jnp.mean(jnp.square(z - mu), axis=-1, keepdims=True)
    return (z - mu) * lax.rsqrt(var + eps) * g + b


def _abrep_fused_kernel(
    tok_ref,                        # (B, S)   int32
    x_ref,                          # (B*S, D) f32  token embeddings
    ln1g_ref, ln1b_ref,             # (1, D)
    wqkv_ref, bqkv_ref,             # (D, 3D), (1, 3D)
    wo_ref, bo_ref,                 # (D, D),  (1, D)
    ln2g_ref, ln2b_ref,             # (1, D)
    w1_ref, b1_ref,                 # (D, 4D), (1, 4D)
    w2_ref, b2_ref,                 # (4D, D), (1, D)
    lnfg_ref, lnfb_ref,             # (1, D)   final LayerNorm
    o_ref,                          # (B*S, D) f32
    h_scratch,                      # VMEM (B*S, D) f32, resident across layers
    *, batch, seq, n_heads, eps, padding_tkn, compute_dtype,
):
    layer = pl.program_id(0)
    n_layers = pl.num_programs(0)
    D = x_ref.shape[-1]
    Dh = D // n_heads
    scale = 1.0 / (Dh ** 0.5)

    # Load the embedded tokens into the resident VMEM hidden state once.
    @pl.when(layer == 0)
    def _():
        h_scratch[...] = x_ref[...]

    def mm(a, w_ref, b_ref):
        # MXU matmul; operands may be cast (e.g. bf16 on v6e/v7x), accumulate f32.
        return jnp.dot(a.astype(compute_dtype),
                       w_ref[...].astype(compute_dtype),
                       preferred_element_type=jnp.float32) + b_ref[...]

    x = h_scratch[...]                                          # (B*S, D) f32

    # Key-padding bias built in-kernel: 0 for real tokens, -1e9 for padding keys.
    mask_bias = jnp.where(tok_ref[...] == padding_tkn, -1e9, 0.0).astype(jnp.float32)  # (B, S)

    # ---- self attention (pre-LN) ----
    hn = _layer_norm(x, ln1g_ref[...], ln1b_ref[...], eps)
    qkv = mm(hn, wqkv_ref, bqkv_ref)                            # (B*S, 3D) f32 (fused QKV)

    ctx_rows = []
    for b in range(batch):                                      # unrolled, static slices
        rows = slice(b * seq, (b + 1) * seq)
        q_b = qkv[rows, 0 * D:1 * D]                            # (S, D)
        k_b = qkv[rows, 1 * D:2 * D]
        v_b = qkv[rows, 2 * D:3 * D]
        bias_b = mask_bias[b:b + 1, :]                          # (1, S)
        heads = []
        for h in range(n_heads):                                # unrolled per-head 2-D dots
            cols = slice(h * Dh, (h + 1) * Dh)
            qh = q_b[:, cols]                                   # (S, Dh)
            kh = k_b[:, cols]
            vh = v_b[:, cols]
            # scores = qh @ kh^T without an explicit transpose
            s = lax.dot_general(qh, kh, (((1,), (1,)), ((), ())),
                                preferred_element_type=jnp.float32)
            s = s * scale + bias_b                              # (S, S), f32
            m = jnp.max(s, axis=-1, keepdims=True)
            e = jnp.exp(s - m)
            denom = jnp.sum(e, axis=-1, keepdims=True)
            p = e * pl.reciprocal(denom, approx=True)           # EUP reciprocal
            heads.append(jnp.dot(p.astype(compute_dtype),
                                 vh.astype(compute_dtype),
                                 preferred_element_type=jnp.float32))
        ctx_rows.append(jnp.concatenate(heads, axis=-1))        # (S, D)
    ctx = jnp.concatenate(ctx_rows, axis=0)                     # (B*S, D)

    x = x + mm(ctx, wo_ref, bo_ref)

    # ---- feed forward (pre-LN) ----
    hn2 = _layer_norm(x, ln2g_ref[...], ln2b_ref[...], eps)
    ff = mm(hn2, w1_ref, b1_ref)
    # TODO(synk): PyTorch's default nn.GELU is the exact erf form; tanh approximation used here.
    ff = jax.nn.gelu(ff, approximate=True)
    ff = mm(ff, w2_ref, b2_ref)
    x = x + ff

    h_scratch[...] = x

    # Final LayerNorm folded into the last layer iteration; single HBM store.
    @pl.when(layer == n_layers - 1)
    def _():
        o_ref[...] = _layer_norm(x, lnfg_ref[...], lnfb_ref[...], eps)


# ----------------------------------------------------------------------------
# Wrapper
# ----------------------------------------------------------------------------
_WEIGHT_ORDER = ["ln1_g", "ln1_b", "wqkv", "bqkv", "wo", "bo",
                 "ln2_g", "ln2_b", "w1", "b1", "w2", "b2"]


def abrep_forward_pallas(tokens, params, padding_tkn, n_heads, eps,
                         compute_dtype=jnp.float32):
    """AbRep.forward (return_attn_weights=False, return_rep_layers=[])."""
    B, S = tokens.shape
    emb = params["emb"]
    D = emb.shape[-1]
    # Embedding gather stays as glue (single XLA gather).
    hidden = emb[tokens].astype(jnp.float32).reshape(B * S, D)

    stacked = params["stacked"]
    stacked_ws = [stacked[name] for name in _WEIGHT_ORDER]
    n_blocks = stacked["wqkv"].shape[0]

    def full_spec(shape):
        nd = len(shape)
        return pl.BlockSpec(shape, lambda l, _nd=nd: (0,) * _nd)

    def layer_spec(shape):
        # Stream one block's weights per grid step (leading n_blocks axis squeezed).
        nd = len(shape)
        return pl.BlockSpec((None,) + tuple(shape[1:]),
                            lambda l, _nd=nd: (l,) + (0,) * (_nd - 1))

    in_specs = (
        [full_spec(tokens.shape), full_spec(hidden.shape)]
        + [layer_spec(w.shape) for w in stacked_ws]
        + [full_spec(params["ln_f_g"].shape), full_spec(params["ln_f_b"].shape)]
    )

    kernel = functools.partial(
        _abrep_fused_kernel, batch=B, seq=S, n_heads=n_heads, eps=eps,
        padding_tkn=padding_tkn, compute_dtype=compute_dtype)

    out = pl.pallas_call(
        kernel,
        out_shape=jax.ShapeDtypeStruct((B * S, D), jnp.float32),
        grid_spec=pltpu.PrefetchScalarGridSpec(
            num_scalar_prefetch=0,
            grid=(n_blocks,),                       # layer axis, hidden stays resident
            in_specs=in_specs,
            out_specs=pl.BlockSpec((B * S, D), lambda l: (0, 0)),
            scratch_shapes=[pltpu.VMEM((B * S, D), jnp.float32)],
        ),
        compiler_params=pltpu.CompilerParams(
            dimension_semantics=("arbitrary",)),    # reduction-like layer loop
    )(tokens, hidden, *stacked_ws, params["ln_f_g"], params["ln_f_b"])

    all_aux_loss = jnp.float32(0.0)                 # no MoE -> aux loss stays 0
    return out.reshape(B, S, D), all_aux_loss


# ----------------------------------------------------------------------------
# Pure-JAX reference (same math) for correctness check
# ----------------------------------------------------------------------------
def abrep_forward_ref(tokens, params, padding_tkn, n_heads, eps):
    h = params["emb"][tokens].astype(jnp.float32)
    mask_bias = jnp.where(tokens == padding_tkn, -1e9, 0.0).astype(jnp.float32)  # (B,S)
    B, S, D = h.shape
    Dh = D // n_heads
    st = params["stacked"]
    n_blocks = st["wqkv"].shape[0]

    def ln(z, g, b):
        mu = jnp.mean(z, -1, keepdims=True)
        var = jnp.mean(jnp.square(z - mu), -1, keepdims=True)
        return (z - mu) * lax.rsqrt(var + eps) * g + b

    for l in range(n_blocks):
        hn = ln(h, st["ln1_g"][l], st["ln1_b"][l])
        qkv = hn @ st["wqkv"][l] + st["bqkv"][l]
        q = qkv[..., 0:D].reshape(B, S, n_heads, Dh)
        k = qkv[..., D:2 * D].reshape(B, S, n_heads, Dh)
        v = qkv[..., 2 * D:3 * D].reshape(B, S, n_heads, Dh)
        s = jnp.einsum("bqhd,bkhd->bhqk", q, k) / jnp.sqrt(jnp.float32(Dh))
        s = s + mask_bias[:, None, None, :]
        p = jax.nn.softmax(s, axis=-1)
        ctx = jnp.einsum("bhqk,bkhd->bqhd", p, v).reshape(B, S, D)
        h = h + ctx @ st["wo"][l] + st["bo"][l]
        hn2 = ln(h, st["ln2_g"][l], st["ln2_b"][l])
        ff = jax.nn.gelu(hn2 @ st["w1"][l] + st["b1"][l], approximate=True) @ st["w2"][l] + st["b2"][l]
        h = h + ff
    return ln(h, params["ln_f_g"], params["ln_f_b"])


# ----------------------------------------------------------------------------
# Deterministic parameter construction (weights stacked over blocks)
# ----------------------------------------------------------------------------
def make_params(key, vocab_size, D, n_blocks, padding_tkn):
    keys = iter(jax.random.split(key, 1 + 8 * n_blocks))

    emb = 0.02 * jax.random.normal(next(keys), (vocab_size, D), jnp.float32)
    emb = emb.at[padding_tkn].set(0.0)   # nn.Embedding(padding_idx=...) zero row

    per_block = {name: [] for name in _WEIGHT_ORDER}
    for _ in range(n_blocks):
        per_block["ln1_g"].append(jnp.ones((1, D), jnp.float32))
        per_block["ln1_b"].append(jnp.zeros((1, D), jnp.float32))
        per_block["wqkv"].append(0.05 * jax.random.normal(next(keys), (D, 3 * D), jnp.float32))
        per_block["bqkv"].append(0.01 * jax.random.normal(next(keys), (1, 3 * D), jnp.float32))
        per_block["wo"].append(0.05 * jax.random.normal(next(keys), (D, D), jnp.float32))
        per_block["bo"].append(0.01 * jax.random.normal(next(keys), (1, D), jnp.float32))
        per_block["ln2_g"].append(jnp.ones((1, D), jnp.float32))
        per_block["ln2_b"].append(jnp.zeros((1, D), jnp.float32))
        per_block["w1"].append(0.05 * jax.random.normal(next(keys), (D, 4 * D), jnp.float32))
        per_block["b1"].append(0.01 * jax.random.normal(next(keys), (1, 4 * D), jnp.float32))
        per_block["w2"].append(0.05 * jax.random.normal(next(keys), (4 * D, D), jnp.float32))
        per_block["b2"].append(0.01 * jax.random.normal(next(keys), (1, D), jnp.float32))

    stacked = {k: jnp.stack(v, axis=0) for k, v in per_block.items()}
    return {
        "emb": emb,
        "stacked": stacked,
        "ln_f_g": jnp.ones((1, D), jnp.float32),
        "ln_f_b": jnp.zeros((1, D), jnp.float32),
    }


# ----------------------------------------------------------------------------
# Main
# ----------------------------------------------------------------------------
if __name__ == "__main__":
    # Small AbRep config
    vocab_size = 24
    hidden_embed_size = 32
    n_attn_heads = 4
    n_encoder_blocks = 2
    padding_tkn = 21
    layer_norm_eps = 1e-12

    B, S = 2, 8

    key = jax.random.PRNGKey(0)
    pkey, tkey = jax.random.split(key)
    params = make_params(pkey, vocab_size, hidden_embed_size, n_encoder_blocks, padding_tkn)

    tokens = jax.random.randint(tkey, (B, S), 0, 20, dtype=jnp.int32)
    # put some padding tokens at the end of the second sequence
    tokens = tokens.at[1, S - 2:].set(padding_tkn)

    out, aux = abrep_forward_pallas(tokens, params, padding_tkn, n_attn_heads, layer_norm_eps)
    out = jax.block_until_ready(out)

    ref = jax.block_until_ready(
        abrep_forward_ref(tokens, params, padding_tkn, n_attn_heads, layer_norm_eps))

    assert out.shape == (B, S, hidden_embed_size)
    assert jnp.all(jnp.isfinite(out))
    assert jnp.allclose(out, ref, atol=3e-2, rtol=3e-2), "Pallas output mismatch vs reference"

    print("KERNEL_OK")
</pallas_src>

<mosaic_0001>
module attributes {stable_mosaic.version = 11 : i64} {
  func.func @_abrep_fused_kernel(%arg0: i32, %arg1: memref<2x8xi32, #tpu.memory_space<vmem>>, %arg2: memref<16x32xf32, #tpu.memory_space<vmem>>, %arg3: memref<1x1x32xf32, #tpu.memory_space<vmem>>, %arg4: memref<1x1x32xf32, #tpu.memory_space<vmem>>, %arg5: memref<1x32x96xf32, #tpu.memory_space<vmem>>, %arg6: memref<1x1x96xf32, #tpu.memory_space<vmem>>, %arg7: memref<1x32x32xf32, #tpu.memory_space<vmem>>, %arg8: memref<1x1x32xf32, #tpu.memory_space<vmem>>, %arg9: memref<1x1x32xf32, #tpu.memory_space<vmem>>, %arg10: memref<1x1x32xf32, #tpu.memory_space<vmem>>, %arg11: memref<1x32x128xf32, #tpu.memory_space<vmem>>, %arg12: memref<1x1x128xf32, #tpu.memory_space<vmem>>, %arg13: memref<1x128x32xf32, #tpu.memory_space<vmem>>, %arg14: memref<1x1x32xf32, #tpu.memory_space<vmem>>, %arg15: memref<1x32xf32, #tpu.memory_space<vmem>>, %arg16: memref<1x32xf32, #tpu.memory_space<vmem>>, %arg17: memref<16x32xf32, #tpu.memory_space<vmem>>, %arg18: memref<16x32xf32, #tpu.memory_space<vmem>>) attributes {dimension_semantics = [#tpu.dimension_semantics<arbitrary>], iteration_bounds = array<i64: 2>, scalar_prefetch = 0 : i64, scratch_operands = 1 : i64, tpu.core_type = #tpu.core_type<tc>, window_params = [{pipeline_mode = #tpu.pipeline_mode<synchronous>, transform_indices = @transform_0, window_bounds = array<i64: 2, 8>}, {pipeline_mode = #tpu.pipeline_mode<synchronous>, transform_indices = @transform_1, window_bounds = array<i64: 16, 32>}, {transform_indices = @transform_2, window_bounds = array<i64: 1, 1, 32>}, {transform_indices = @transform_3, window_bounds = array<i64: 1, 1, 32>}, {transform_indices = @transform_4, window_bounds = array<i64: 1, 32, 96>}, {transform_indices = @transform_5, window_bounds = array<i64: 1, 1, 96>}, {transform_indices = @transform_6, window_bounds = array<i64: 1, 32, 32>}, {transform_indices = @transform_7, window_bounds = array<i64: 1, 1, 32>}, {transform_indices = @transform_8, window_bounds = array<i64: 1, 1, 32>}, {transform_indices = @transform_9, window_bounds = array<i64: 1, 1, 32>}, {transform_indices = @transform_10, window_bounds = array<i64: 1, 32, 128>}, {transform_indices = @transform_11, window_bounds = array<i64: 1, 1, 128>}, {transform_indices = @transform_12, window_bounds = array<i64: 1, 128, 32>}, {transform_indices = @transform_13, window_bounds = array<i64: 1, 1, 32>}, {pipeline_mode = #tpu.pipeline_mode<synchronous>, transform_indices = @transform_14, window_bounds = array<i64: 1, 32>}, {pipeline_mode = #tpu.pipeline_mode<synchronous>, transform_indices = @transform_15, window_bounds = array<i64: 1, 32>}, {pipeline_mode = #tpu.pipeline_mode<synchronous>, transform_indices = @transform_16, window_bounds = array<i64: 16, 32>}]} {
    %c0_i32 = arith.constant 0 : i32
    %0 = arith.cmpi eq, %arg0, %c0_i32 : i32
    %1 = arith.extui %0 : i1 to i32
    %c0_i32_0 = arith.constant 0 : i32
    %2 = arith.cmpi ne, %1, %c0_i32_0 : i32
    scf.if %2 {
      %c0_102 = arith.constant 0 : index
      %c0_103 = arith.constant 0 : index
      %272 = vector.load %arg2[%c0_102, %c0_103] : memref<16x32xf32, #tpu.memory_space<vmem>>, vector<16x32xf32>
      %c0_104 = arith.constant 0 : index
      %c0_105 = arith.constant 0 : index
      %273 = vector.load %arg18[%c0_104, %c0_105] : memref<16x32xf32, #tpu.memory_space<vmem>>, vector<16x32xf32>
      tpu.vector_store %arg18[%c0_104, %c0_105], %272 {strides = array<i32>} : memref<16x32xf32, #tpu.memory_space<vmem>>, vector<16x32xf32>,
    } else {
    }
    %c0 = arith.constant 0 : index
    %c0_1 = arith.constant 0 : index
    %3 = vector.load %arg18[%c0, %c0_1] : memref<16x32xf32, #tpu.memory_space<vmem>>, vector<16x32xf32>
    %c0_2 = arith.constant 0 : index
    %c0_3 = arith.constant 0 : index
    %4 = vector.load %arg1[%c0_2, %c0_3] : memref<2x8xi32, #tpu.memory_space<vmem>>, vector<2x8xi32>
    %c21_i32 = arith.constant 21 : i32
    %5 = vector.broadcast %c21_i32 : i32 to vector<2x8xi32>
    %6 = arith.cmpi eq, %4, %5 : vector<2x8xi32>
    %cst = arith.constant -1.000000e+09 : f32
    %cst_4 = arith.constant 0.000000e+00 : f32
    %7 = vector.broadcast %cst : f32 to vector<2x8xf32>
    %8 = vector.broadcast %cst_4 : f32 to vector<2x8xf32>
    %9 = arith.select %6, %7, %8 : vector<2x8xi1>, vector<2x8xf32>
    %c0_5 = arith.constant 0 : index
    %c0_6 = arith.constant 0 : index
    %c0_7 = arith.constant 0 : index
    %10 = vector.load %arg3[%c0_5, %c0_6, %c0_7] : memref<1x1x32xf32, #tpu.memory_space<vmem>>, vector<1x1x32xf32>
    %11 = vector.shape_cast %10 : vector<1x1x32xf32> to vector<1x32xf32>
    %c0_8 = arith.constant 0 : index
    %c0_9 = arith.constant 0 : index
    %c0_10 = arith.constant 0 : index
    %12 = vector.load %arg4[%c0_8, %c0_9, %c0_10] : memref<1x1x32xf32, #tpu.memory_space<vmem>>, vector<1x1x32xf32>
    %13 = vector.shape_cast %12 : vector<1x1x32xf32> to vector<1x32xf32>
    %cst_11 = arith.constant dense<0.000000e+00> : vector<16xf32>
    %14 = vector.multi_reduction <add>, %3, %cst_11 [1] : vector<16x32xf32> to vector<16xf32>
    %15 = vector.shape_cast %14 : vector<16xf32> to vector<16x1xf32>
    %cst_12 = arith.constant 3.200000e+01 : f32
    %16 = vector.broadcast %cst_12 : f32 to vector<16x1xf32>
    %17 = arith.divf %15, %16 : vector<16x1xf32>
    %18 = vector.broadcast %17 : vector<16x1xf32> to vector<16x32xf32>
    %19 = arith.subf %3, %18 : vector<16x32xf32>
    %20 = arith.mulf %19, %19 : vector<16x32xf32>
    %cst_13 = arith.constant dense<0.000000e+00> : vector<16xf32>
    %21 = vector.multi_reduction <add>, %20, %cst_13 [1] : vector<16x32xf32> to vector<16xf32>
    %22 = vector.shape_cast %21 : vector<16xf32> to vector<16x1xf32>
    %cst_14 = arith.constant 3.200000e+01 : f32
    %23 = vector.broadcast %cst_14 : f32 to vector<16x1xf32>
    %24 = arith.divf %22, %23 : vector<16x1xf32>
    %25 = vector.broadcast %17 : vector<16x1xf32> to vector<16x32xf32>
    %26 = arith.subf %3, %25 : vector<16x32xf32>
    %cst_15 = arith.constant 9.99999996E-13 : f32
    %27 = vector.broadcast %cst_15 : f32 to vector<16x1xf32>
    %28 = arith.addf %24, %27 : vector<16x1xf32>
    %29 = math.rsqrt %28 : vector<16x1xf32>
    %30 = vector.broadcast %29 : vector<16x1xf32> to vector<16x32xf32>
    %31 = arith.mulf %26, %30 : vector<16x32xf32>
    %32 = vector.broadcast %11 : vector<1x32xf32> to vector<16x32xf32>
    %33 = arith.mulf %31, %32 : vector<16x32xf32>
    %34 = vector.broadcast %13 : vector<1x32xf32> to vector<16x32xf32>
    %35 = arith.addf %33, %34 : vector<16x32xf32>
    %c0_16 = arith.constant 0 : index
    %c0_17 = arith.constant 0 : index
    %c0_18 = arith.constant 0 : index
    %36 = vector.load %arg5[%c0_16, %c0_17, %c0_18] : memref<1x32x96xf32, #tpu.memory_space<vmem>>, vector<1x32x96xf32>
    %37 = vector.shape_cast %36 : vector<1x32x96xf32> to vector<32x96xf32>
    %cst_19 = arith.constant dense<0.000000e+00> : vector<16x96xf32>
    %38 = tpu.matmul %35, %37, %cst_19 {dimension_numbers = #tpu.dot_dimension_numbers<[1], [0], [0], [1], [0, 0, 1, 1], [], []>} : vector<16x32xf32>, vector<32x96xf32>, vector<16x96xf32> -> vector<16x96xf32>
    %c0_20 = arith.constant 0 : index
    %c0_21 = arith.constant 0 : index
    %c0_22 = arith.constant 0 : index
    %39 = vector.load %arg6[%c0_20, %c0_21, %c0_22] : memref<1x1x96xf32, #tpu.memory_space<vmem>>, vector<1x1x96xf32>
    %40 = vector.shape_cast %39 : vector<1x1x96xf32> to vector<1x96xf32>
    %41 = vector.broadcast %40 : vector<1x96xf32> to vector<16x96xf32>
    %42 = arith.addf %38, %41 : vector<16x96xf32>
    %43 = vector.extract_strided_slice %42 {offsets = [0, 0], sizes = [8, 32], strides = [1, 1]} : vector<16x96xf32> to vector<8x32xf32>
    %44 = vector.extract_strided_slice %42 {offsets = [0, 32], sizes = [8, 32], strides = [1, 1]} : vector<16x96xf32> to vector<8x32xf32>
    %45 = vector.extract_strided_slice %42 {offsets = [0, 64], sizes = [8, 32], strides = [1, 1]} : vector<16x96xf32> to vector<8x32xf32>
    %46 = vector.extract_strided_slice %9 {offsets = [0, 0], sizes = [1, 8], strides = [1, 1]} : vector<2x8xf32> to vector<1x8xf32>
    %47 = vector.extract_strided_slice %43 {offsets = [0, 0], sizes = [8, 8], strides = [1, 1]} : vector<8x32xf32> to vector<8x8xf32>
    %48 = vector.extract_strided_slice %44 {offsets = [0, 0], sizes = [8, 8], strides = [1, 1]} : vector<8x32xf32> to vector<8x8xf32>
    %49 = vector.extract_strided_slice %45 {offsets = [0, 0], sizes = [8, 8], strides = [1, 1]} : vector<8x32xf32> to vector<8x8xf32>
    %cst_23 = arith.constant dense<0.000000e+00> : vector<8x8xf32>
    %50 = tpu.matmul %47, %48, %cst_23 {dimension_numbers = #tpu.dot_dimension_numbers<[1], [1], [0], [0], [0, 0, 1, 0], [], []>} : vector<8x8xf32>, vector<8x8xf32>, vector<8x8xf32> -> vector<8x8xf32>
    %cst_24 = arith.constant 0.353553385 : f32
    %51 = vector.broadcast %cst_24 : f32 to vector<8x8xf32>
    %52 = arith.mulf %50, %51 : vector<8x8xf32>
    %53 = vector.broadcast %46 : vector<1x8xf32> to vector<8x8xf32>
    %54 = arith.addf %52, %53 : vector<8x8xf32>
    %cst_25 = arith.constant dense<0xFF800000> : vector<8xf32>
    %55 = vector.multi_reduction <maximumf>, %54, %cst_25 [1] : vector<8x8xf32> to vector<8xf32>
    %56 = vector.shape_cast %55 : vector<8xf32> to vector<8x1xf32>
    %57 = vector.broadcast %56 : vector<8x1xf32> to vector<8x8xf32>
    %58 = arith.subf %54, %57 : vector<8x8xf32>
    %59 = math.exp %58 : vector<8x8xf32>
    %cst_26 = arith.constant dense<0.000000e+00> : vector<8xf32>
    %60 = vector.multi_reduction <add>, %59, %cst_26 [1] : vector<8x8xf32> to vector<8xf32>
    %61 = vector.shape_cast %60 : vector<8xf32> to vector<8x1xf32>
    %62 = tpu.reciprocal %61 {approx = true} : vector<8x1xf32> -> vector<8x1xf32>
    %63 = vector.broadcast %62 : vector<8x1xf32> to vector<8x8xf32>
    %64 = arith.mulf %59, %63 : vector<8x8xf32>
    %cst_27 = arith.constant dense<0.000000e+00> : vector<8x8xf32>
    %65 = tpu.matmul %64, %49, %cst_27 {dimension_numbers = #tpu.dot_dimension_numbers<[1], [0], [0], [1], [0, 0, 1, 1], [], []>} : vector<8x8xf32>, vector<8x8xf32>, vector<8x8xf32> -> vector<8x8xf32>
    %66 = vector.extract_strided_slice %43 {offsets = [0, 8], sizes = [8, 8], strides = [1, 1]} : vector<8x32xf32> to vector<8x8xf32>
    %67 = vector.extract_strided_slice %44 {offsets = [0, 8], sizes = [8, 8], strides = [1, 1]} : vector<8x32xf32> to vector<8x8xf32>
    %68 = vector.extract_strided_slice %45 {offsets = [0, 8], sizes = [8, 8], strides = [1, 1]} : vector<8x32xf32> to vector<8x8xf32>
    %cst_28 = arith.constant dense<0.000000e+00> : vector<8x8xf32>
    %69 = tpu.matmul %66, %67, %cst_28 {dimension_numbers = #tpu.dot_dimension_numbers<[1], [1], [0], [0], [0, 0, 1, 0], [], []>} : vector<8x8xf32>, vector<8x8xf32>, vector<8x8xf32> -> vector<8x8xf32>
    %cst_29 = arith.constant 0.353553385 : f32
    %70 = vector.broadcast %cst_29 : f32 to vector<8x8xf32>
    %71 = arith.mulf %69, %70 : vector<8x8xf32>
    %72 = vector.broadcast %46 : vector<1x8xf32> to vector<8x8xf32>
    %73 = arith.addf %71, %72 : vector<8x8xf32>
    %cst_30 = arith.constant dense<0xFF800000> : vector<8xf32>
    %74 = vector.multi_reduction <maximumf>, %73, %cst_30 [1] : vector<8x8xf32> to vector<8xf32>
    %75 = vector.shape_cast %74 : vector<8xf32> to vector<8x1xf32>
    %76 = vector.broadcast %75 : vector<8x1xf32> to vector<8x8xf32>
    %77 = arith.subf %73, %76 : vector<8x8xf32>
    %78 = math.exp %77 : vector<8x8xf32>
    %cst_31 = arith.constant dense<0.000000e+00> : vector<8xf32>
    %79 = vector.multi_reduction <add>, %78, %cst_31 [1] : vector<8x8xf32> to vector<8xf32>
    %80 = vector.shape_cast %79 : vector<8xf32> to vector<8x1xf32>
    %81 = tpu.reciprocal %80 {approx = true} : vector<8x1xf32> -> vector<8x1xf32>
    %82 = vector.broadcast %81 : vector<8x1xf32> to vector<8x8xf32>
    %83 = arith.mulf %78, %82 : vector<8x8xf32>
    %cst_32 = arith.constant dense<0.000000e+00> : vector<8x8xf32>
    %84 = tpu.matmul %83, %68, %cst_32 {dimension_numbers = #tpu.dot_dimension_numbers<[1], [0], [0], [1], [0, 0, 1, 1], [], []>} : vector<8x8xf32>, vector<8x8xf32>, vector<8x8xf32> -> vector<8x8xf32>
    %85 = vector.extract_strided_slice %43 {offsets = [0, 16], sizes = [8, 8], strides = [1, 1]} : vector<8x32xf32> to vector<8x8xf32>
    %86 = vector.extract_strided_slice %44 {offsets = [0, 16], sizes = [8, 8], strides = [1, 1]} : vector<8x32xf32> to vector<8x8xf32>
    %87 = vector.extract_strided_slice %45 {offsets = [0, 16], sizes = [8, 8], strides = [1, 1]} : vector<8x32xf32> to vector<8x8xf32>
    %cst_33 = arith.constant dense<0.000000e+00> : vector<8x8xf32>
    %88 = tpu.matmul %85, %86, %cst_33 {dimension_numbers = #tpu.dot_dimension_numbers<[1], [1], [0], [0], [0, 0, 1, 0], [], []>} : vector<8x8xf32>, vector<8x8xf32>, vector<8x8xf32> -> vector<8x8xf32>
    %cst_34 = arith.constant 0.353553385 : f32
    %89 = vector.broadcast %cst_34 : f32 to vector<8x8xf32>
    %90 = arith.mulf %88, %89 : vector<8x8xf32>
    %91 = vector.broadcast %46 : vector<1x8xf32> to vector<8x8xf32>
    %92 = arith.addf %90, %91 : vector<8x8xf32>
    %cst_35 = arith.constant dense<0xFF800000> : vector<8xf32>
    %93 = vector.multi_reduction <maximumf>, %92, %cst_35 [1] : vector<8x8xf32> to vector<8xf32>
    %94 = vector.shape_cast %93 : vector<8xf32> to vector<8x1xf32>
    %95 = vector.broadcast %94 : vector<8x1xf32> to vector<8x8xf32>
    %96 = arith.subf %92, %95 : vector<8x8xf32>
    %97 = math.exp %96 : vector<8x8xf32>
    %cst_36 = arith.constant dense<0.000000e+00> : vector<8xf32>
    %98 = vector.multi_reduction <add>, %97, %cst_36 [1] : vector<8x8xf32> to vector<8xf32>
    %99 = vector.shape_cast %98 : vector<8xf32> to vector<8x1xf32>
    %100 = tpu.reciprocal %99 {approx = true} : vector<8x1xf32> -> vector<8x1xf32>
    %101 = vector.broadcast %100 : vector<8x1xf32> to vector<8x8xf32>
    %102 = arith.mulf %97, %101 : vector<8x8xf32>
    %cst_37 = arith.constant dense<0.000000e+00> : vector<8x8xf32>
    %103 = tpu.matmul %102, %87, %cst_37 {dimension_numbers = #tpu.dot_dimension_numbers<[1], [0], [0], [1], [0, 0, 1, 1], [], []>} : vector<8x8xf32>, vector<8x8xf32>, vector<8x8xf32> -> vector<8x8xf32>
    %104 = vector.extract_strided_slice %43 {offsets = [0, 24], sizes = [8, 8], strides = [1, 1]} : vector<8x32xf32> to vector<8x8xf32>
    %105 = vector.extract_strided_slice %44 {offsets = [0, 24], sizes = [8, 8], strides = [1, 1]} : vector<8x32xf32> to vector<8x8xf32>
    %106 = vector.extract_strided_slice %45 {offsets = [0, 24], sizes = [8, 8], strides = [1, 1]} : vector<8x32xf32> to vector<8x8xf32>
    %cst_38 = arith.constant dense<0.000000e+00> : vector<8x8xf32>
    %107 = tpu.matmul %104, %105, %cst_38 {dimension_numbers = #tpu.dot_dimension_numbers<[1], [1], [0], [0], [0, 0, 1, 0], [], []>} : vector<8x8xf32>, vector<8x8xf32>, vector<8x8xf32> -> vector<8x8xf32>
    %cst_39 = arith.constant 0.353553385 : f32
    %108 = vector.broadcast %cst_39 : f32 to vector<8x8xf32>
    %109 = arith.mulf %107, %108 : vector<8x8xf32>
    %110 = vector.broadcast %46 : vector<1x8xf32> to vector<8x8xf32>
    %111 = arith.addf %109, %110 : vector<8x8xf32>
    %cst_40 = arith.constant dense<0xFF800000> : vector<8xf32>
    %112 = vector.multi_reduction <maximumf>, %111, %cst_40 [1] : vector<8x8xf32> to vector<8xf32>
    %113 = vector.shape_cast %112 : vector<8xf32> to vector<8x1xf32>
    %114 = vector.broadcast %113 : vector<8x1xf32> to vector<8x8xf32>
    %115 = arith.subf %111, %114 : vector<8x8xf32>
    %116 = math.exp %115 : vector<8x8xf32>
    %cst_41 = arith.constant dense<0.000000e+00> : vector<8xf32>
    %117 = vector.multi_reduction <add>, %116, %cst_41 [1] : vector<8x8xf32> to vector<8xf32>
    %118 = vector.shape_cast %117 : vector<8xf32> to vector<8x1xf32>
    %119 = tpu.reciprocal %118 {approx = true} : vector<8x1xf32> -> vector<8x1xf32>
    %120 = vector.broadcast %119 : vector<8x1xf32> to vector<8x8xf32>
    %121 = arith.mulf %116, %120 : vector<8x8xf32>
    %cst_42 = arith.constant dense<0.000000e+00> : vector<8x8xf32>
    %122 = tpu.matmul %121, %106, %cst_42 {dimension_numbers = #tpu.dot_dimension_numbers<[1], [0], [0], [1], [0, 0, 1, 1], [], []>} : vector<8x8xf32>, vector<8x8xf32>, vector<8x8xf32> -> vector<8x8xf32>
    %123 = tpu.concatenate %65, %84, %103, %122 in 1 : vector<8x8xf32>, vector<8x8xf32>, vector<8x8xf32>, vector<8x8xf32> -> vector<8x32xf32>
    %124 = vector.extract_strided_slice %42 {offsets = [8, 0], sizes = [8, 32], strides = [1, 1]} : vector<16x96xf32> to vector<8x32xf32>
    %125 = vector.extract_strided_slice %42 {offsets = [8, 32], sizes = [8, 32], strides = [1, 1]} : vector<16x96xf32> to vector<8x32xf32>
    %126 = vector.extract_strided_slice %42 {offsets = [8, 64], sizes = [8, 32], strides = [1, 1]} : vector<16x96xf32> to vector<8x32xf32>
    %127 = vector.extract_strided_slice %9 {offsets = [1, 0], sizes = [1, 8], strides = [1, 1]} : vector<2x8xf32> to vector<1x8xf32>
    %128 = vector.extract_strided_slice %124 {offsets = [0, 0], sizes = [8, 8], strides = [1, 1]} : vector<8x32xf32> to vector<8x8xf32>
    %129 = vector.extract_strided_slice %125 {offsets = [0, 0], sizes = [8, 8], strides = [1, 1]} : vector<8x32xf32> to vector<8x8xf32>
    %130 = vector.extract_strided_slice %126 {offsets = [0, 0], sizes = [8, 8], strides = [1, 1]} : vector<8x32xf32> to vector<8x8xf32>
    %cst_43 = arith.constant dense<0.000000e+00> : vector<8x8xf32>
    %131 = tpu.matmul %128, %129, %cst_43 {dimension_numbers = #tpu.dot_dimension_numbers<[1], [1], [0], [0], [0, 0, 1, 0], [], []>} : vector<8x8xf32>, vector<8x8xf32>, vector<8x8xf32> -> vector<8x8xf32>
    %cst_44 = arith.constant 0.353553385 : f32
    %132 = vector.broadcast %cst_44 : f32 to vector<8x8xf32>
    %133 = arith.mulf %131, %132 : vector<8x8xf32>
    %134 = vector.broadcast %127 : vector<1x8xf32> to vector<8x8xf32>
    %135 = arith.addf %133, %134 : vector<8x8xf32>
    %cst_45 = arith.constant dense<0xFF800000> : vector<8xf32>
    %136 = vector.multi_reduction <maximumf>, %135, %cst_45 [1] : vector<8x8xf32> to vector<8xf32>
    %137 = vector.shape_cast %136 : vector<8xf32> to vector<8x1xf32>
    %138 = vector.broadcast %137 : vector<8x1xf32> to vector<8x8xf32>
    %139 = arith.subf %135, %138 : vector<8x8xf32>
    %140 = math.exp %139 : vector<8x8xf32>
    %cst_46 = arith.constant dense<0.000000e+00> : vector<8xf32>
    %141 = vector.multi_reduction <add>, %140, %cst_46 [1] : vector<8x8xf32> to vector<8xf32>
    %142 = vector.shape_cast %141 : vector<8xf32> to vector<8x1xf32>
    %143 = tpu.reciprocal %142 {approx = true} : vector<8x1xf32> -> vector<8x1xf32>
    %144 = vector.broadcast %143 : vector<8x1xf32> to vector<8x8xf32>
    %145 = arith.mulf %140, %144 : vector<8x8xf32>
    %cst_47 = arith.constant dense<0.000000e+00> : vector<8x8xf32>
    %146 = tpu.matmul %145, %130, %cst_47 {dimension_numbers = #tpu.dot_dimension_numbers<[1], [0], [0], [1], [0, 0, 1, 1], [], []>} : vector<8x8xf32>, vector<8x8xf32>, vector<8x8xf32> -> vector<8x8xf32>
    %147 = vector.extract_strided_slice %124 {offsets = [0, 8], sizes = [8, 8], strides = [1, 1]} : vector<8x32xf32> to vector<8x8xf32>
    %148 = vector.extract_strided_slice %125 {offsets = [0, 8], sizes = [8, 8], strides = [1, 1]} : vector<8x32xf32> to vector<8x8xf32>
    %149 = vector.extract_strided_slice %126 {offsets = [0, 8], sizes = [8, 8], strides = [1, 1]} : vector<8x32xf32> to vector<8x8xf32>
    %cst_48 = arith.constant dense<0.000000e+00> : vector<8x8xf32>
    %150 = tpu.matmul %147, %148, %cst_48 {dimension_numbers = #tpu.dot_dimension_numbers<[1], [1], [0], [0], [0, 0, 1, 0], [], []>} : vector<8x8xf32>, vector<8x8xf32>, vector<8x8xf32> -> vector<8x8xf32>
    %cst_49 = arith.constant 0.353553385 : f32
    %151 = vector.broadcast %cst_49 : f32 to vector<8x8xf32>
    %152 = arith.mulf %150, %151 : vector<8x8xf32>
    %153 = vector.broadcast %127 : vector<1x8xf32> to vector<8x8xf32>
    %154 = arith.addf %152, %153 : vector<8x8xf32>
    %cst_50 = arith.constant dense<0xFF800000> : vector<8xf32>
    %155 = vector.multi_reduction <maximumf>, %154, %cst_50 [1] : vector<8x8xf32> to vector<8xf32>
    %156 = vector.shape_cast %155 : vector<8xf32> to vector<8x1xf32>
    %157 = vector.broadcast %156 : vector<8x1xf32> to vector<8x8xf32>
    %158 = arith.subf %154, %157 : vector<8x8xf32>
    %159 = math.exp %158 : vector<8x8xf32>
    %cst_51 = arith.constant dense<0.000000e+00> : vector<8xf32>
    %160 = vector.multi_reduction <add>, %159, %cst_51 [1] : vector<8x8xf32> to vector<8xf32>
    %161 = vector.shape_cast %160 : vector<8xf32> to vector<8x1xf32>
    %162 = tpu.reciprocal %161 {approx = true} : vector<8x1xf32> -> vector<8x1xf32>
    %163 = vector.broadcast %162 : vector<8x1xf32> to vector<8x8xf32>
    %164 = arith.mulf %159, %163 : vector<8x8xf32>
    %cst_52 = arith.constant dense<0.000000e+00> : vector<8x8xf32>
    %165 = tpu.matmul %164, %149, %cst_52 {dimension_numbers = #tpu.dot_dimension_numbers<[1], [0], [0], [1], [0, 0, 1, 1], [], []>} : vector<8x8xf32>, vector<8x8xf32>, vector<8x8xf32> -> vector<8x8xf32>
    %166 = vector.extract_strided_slice %124 {offsets = [0, 16], sizes = [8, 8], strides = [1, 1]} : vector<8x32xf32> to vector<8x8xf32>
    %167 = vector.extract_strided_slice %125 {offsets = [0, 16], sizes = [8, 8], strides = [1, 1]} : vector<8x32xf32> to vector<8x8xf32>
    %168 = vector.extract_strided_slice %126 {offsets = [0, 16], sizes = [8, 8], strides = [1, 1]} : vector<8x32xf32> to vector<8x8xf32>
    %cst_53 = arith.constant dense<0.000000e+00> : vector<8x8xf32>
    %169 = tpu.matmul %166, %167, %cst_53 {dimension_numbers = #tpu.dot_dimension_numbers<[1], [1], [0], [0], [0, 0, 1, 0], [], []>} : vector<8x8xf32>, vector<8x8xf32>, vector<8x8xf32> -> vector<8x8xf32>
    %cst_54 = arith.constant 0.353553385 : f32
    %170 = vector.broadcast %cst_54 : f32 to vector<8x8xf32>
    %171 = arith.mulf %169, %170 : vector<8x8xf32>
    %172 = vector.broadcast %127 : vector<1x8xf32> to vector<8x8xf32>
    %173 = arith.addf %171, %172 : vector<8x8xf32>
    %cst_55 = arith.constant dense<0xFF800000> : vector<8xf32>
    %174 = vector.multi_reduction <maximumf>, %173, %cst_55 [1] : vector<8x8xf32> to vector<8xf32>
    %175 = vector.shape_cast %174 : vector<8xf32> to vector<8x1xf32>
    %176 = vector.broadcast %175 : vector<8x1xf32> to vector<8x8xf32>
    %177 = arith.subf %173, %176 : vector<8x8xf32>
    %178 = math.exp %177 : vector<8x8xf32>
    %cst_56 = arith.constant dense<0.000000e+00> : vector<8xf32>
    %179 = vector.multi_reduction <add>, %178, %cst_56 [1] : vector<8x8xf32> to vector<8xf32>
    %180 = vector.shape_cast %179 : vector<8xf32> to vector<8x1xf32>
    %181 = tpu.reciprocal %180 {approx = true} : vector<8x1xf32> -> vector<8x1xf32>
    %182 = vector.broadcast %181 : vector<8x1xf32> to vector<8x8xf32>
    %183 = arith.mulf %178, %182 : vector<8x8xf32>
    %cst_57 = arith.constant dense<0.000000e+00> : vector<8x8xf32>
    %184 = tpu.matmul %183, %168, %cst_57 {dimension_numbers = #tpu.dot_dimension_numbers<[1], [0], [0], [1], [0, 0, 1, 1], [], []>} : vector<8x8xf32>, vector<8x8xf32>, vector<8x8xf32> -> vector<8x8xf32>
    %185 = vector.extract_strided_slice %124 {offsets = [0, 24], sizes = [8, 8], strides = [1, 1]} : vector<8x32xf32> to vector<8x8xf32>
    %186 = vector.extract_strided_slice %125 {offsets = [0, 24], sizes = [8, 8], strides = [1, 1]} : vector<8x32xf32> to vector<8x8xf32>
    %187 = vector.extract_strided_slice %126 {offsets = [0, 24], sizes = [8, 8], strides = [1, 1]} : vector<8x32xf32> to vector<8x8xf32>
    %cst_58 = arith.constant dense<0.000000e+00> : vector<8x8xf32>
    %188 = tpu.matmul %185, %186, %cst_58 {dimension_numbers = #tpu.dot_dimension_numbers<[1], [1], [0], [0], [0, 0, 1, 0], [], []>} : vector<8x8xf32>, vector<8x8xf32>, vector<8x8xf32> -> vector<8x8xf32>
    %cst_59 = arith.constant 0.353553385 : f32
    %189 = vector.broadcast %cst_59 : f32 to vector<8x8xf32>
    %190 = arith.mulf %188, %189 : vector<8x8xf32>
    %191 = vector.broadcast %127 : vector<1x8xf32> to vector<8x8xf32>
    %192 = arith.addf %190, %191 : vector<8x8xf32>
    %cst_60 = arith.constant dense<0xFF800000> : vector<8xf32>
    %193 = vector.multi_reduction <maximumf>, %192, %cst_60 [1] : vector<8x8xf32> to vector<8xf32>
    %194 = vector.shape_cast %193 : vector<8xf32> to vector<8x1xf32>
    %195 = vector.broadcast %194 : vector<8x1xf32> to vector<8x8xf32>
    %196 = arith.subf %192, %195 : vector<8x8xf32>
    %197 = math.exp %196 : vector<8x8xf32>
    %cst_61 = arith.constant dense<0.000000e+00> : vector<8xf32>
    %198 = vector.multi_reduction <add>, %197, %cst_61 [1] : vector<8x8xf32> to vector<8xf32>
    %199 = vector.shape_cast %198 : vector<8xf32> to vector<8x1xf32>
    %200 = tpu.reciprocal %199 {approx = true} : vector<8x1xf32> -> vector<8x1xf32>
    %201 = vector.broadcast %200 : vector<8x1xf32> to vector<8x8xf32>
    %202 = arith.mulf %197, %201 : vector<8x8xf32>
    %cst_62 = arith.constant dense<0.000000e+00> : vector<8x8xf32>
    %203 = tpu.matmul %202, %187, %cst_62 {dimension_numbers = #tpu.dot_dimension_numbers<[1], [0], [0], [1], [0, 0, 1, 1], [], []>} : vector<8x8xf32>, vector<8x8xf32>, vector<8x8xf32> -> vector<8x8xf32>
    %204 = tpu.concatenate %146, %165, %184, %203 in 1 : vector<8x8xf32>, vector<8x8xf32>, vector<8x8xf32>, vector<8x8xf32> -> vector<8x32xf32>
    %205 = tpu.concatenate %123, %204 in 0 : vector<8x32xf32>, vector<8x32xf32> -> vector<16x32xf32>
    %c0_63 = arith.constant 0 : index
    %c0_64 = arith.constant 0 : index
    %c0_65 = arith.constant 0 : index
    %206 = vector.load %arg7[%c0_63, %c0_64, %c0_65] : memref<1x32x32xf32, #tpu.memory_space<vmem>>, vector<1x32x32xf32>
    %207 = vector.shape_cast %206 : vector<1x32x32xf32> to vector<32x32xf32>
    %cst_66 = arith.constant dense<0.000000e+00> : vector<16x32xf32>
    %208 = tpu.matmul %205, %207, %cst_66 {dimension_numbers = #tpu.dot_dimension_numbers<[1], [0], [0], [1], [0, 0, 1, 1], [], []>} : vector<16x32xf32>, vector<32x32xf32>, vector<16x32xf32> -> vector<16x32xf32>
    %c0_67 = arith.constant 0 : index
    %c0_68 = arith.constant 0 : index
    %c0_69 = arith.constant 0 : index
    %209 = vector.load %arg8[%c0_67, %c0_68, %c0_69] : memref<1x1x32xf32, #tpu.memory_space<vmem>>, vector<1x1x32xf32>
    %210 = vector.shape_cast %209 : vector<1x1x32xf32> to vector<1x32xf32>
    %211 = vector.broadcast %210 : vector<1x32xf32> to vector<16x32xf32>
    %212 = arith.addf %208, %211 : vector<16x32xf32>
    %213 = arith.addf %3, %212 : vector<16x32xf32>
    %c0_70 = arith.constant 0 : index
    %c0_71 = arith.constant 0 : index
    %c0_72 = arith.constant 0 : index
    %214 = vector.load %arg9[%c0_70, %c0_71, %c0_72] : memref<1x1x32xf32, #tpu.memory_space<vmem>>, vector<1x1x32xf32>
    %215 = vector.shape_cast %214 : vector<1x1x32xf32> to vector<1x32xf32>
    %c0_73 = arith.constant 0 : index
    %c0_74 = arith.constant 0 : index
    %c0_75 = arith.constant 0 : index
    %216 = vector.load %arg10[%c0_73, %c0_74, %c0_75] : memref<1x1x32xf32, #tpu.memory_space<vmem>>, vector<1x1x32xf32>
    %217 = vector.shape_cast %216 : vector<1x1x32xf32> to vector<1x32xf32>
    %cst_76 = arith.constant dense<0.000000e+00> : vector<16xf32>
    %218 = vector.multi_reduction <add>, %213, %cst_76 [1] : vector<16x32xf32> to vector<16xf32>
    %219 = vector.shape_cast %218 : vector<16xf32> to vector<16x1xf32>
    %cst_77 = arith.constant 3.200000e+01 : f32
    %220 = vector.broadcast %cst_77 : f32 to vector<16x1xf32>
    %221 = arith.divf %219, %220 : vector<16x1xf32>
    %222 = vector.broadcast %221 : vector<16x1xf32> to vector<16x32xf32>
    %223 = arith.subf %213, %222 : vector<16x32xf32>
    %224 = arith.mulf %223, %223 : vector<16x32xf32>
    %cst_78 = arith.constant dense<0.000000e+00> : vector<16xf32>
    %225 = vector.multi_reduction <add>, %224, %cst_78 [1] : vector<16x32xf32> to vector<16xf32>
    %226 = vector.shape_cast %225 : vector<16xf32> to vector<16x1xf32>
    %cst_79 = arith.constant 3.200000e+01 : f32
    %227 = vector.broadcast %cst_79 : f32 to vector<16x1xf32>
    %228 = arith.divf %226, %227 : vector<16x1xf32>
    %229 = vector.broadcast %221 : vector<16x1xf32> to vector<16x32xf32>
    %230 = arith.subf %213, %229 : vector<16x32xf32>
    %cst_80 = arith.constant 9.99999996E-13 : f32
    %231 = vector.broadcast %cst_80 : f32 to vector<16x1xf32>
    %232 = arith.addf %228, %231 : vector<16x1xf32>
    %233 = math.rsqrt %232 : vector<16x1xf32>
    %234 = vector.broadcast %233 : vector<16x1xf32> to vector<16x32xf32>
    %235 = arith.mulf %230, %234 : vector<16x32xf32>
    %236 = vector.broadcast %215 : vector<1x32xf32> to vector<16x32xf32>
    %237 = arith.mulf %235, %236 : vector<16x32xf32>
    %238 = vector.broadcast %217 : vector<1x32xf32> to vector<16x32xf32>
    %239 = arith.addf %237, %238 : vector<16x32xf32>
    %c0_81 = arith.constant 0 : index
    %c0_82 = arith.constant 0 : index
    %c0_83 = arith.constant 0 : index
    %240 = vector.load %arg11[%c0_81, %c0_82, %c0_83] : memref<1x32x128xf32, #tpu.memory_space<vmem>>, vector<1x32x128xf32>
    %241 = vector.shape_cast %240 : vector<1x32x128xf32> to vector<32x128xf32>
    %cst_84 = arith.constant dense<0.000000e+00> : vector<16x128xf32>
    %242 = tpu.matmul %239, %241, %cst_84 {dimension_numbers = #tpu.dot_dimension_numbers<[1], [0], [0], [1], [0, 0, 1, 1], [], []>} : vector<16x32xf32>, vector<32x128xf32>, vector<16x128xf32> -> vector<16x128xf32>
    %c0_85 = arith.constant 0 : index
    %c0_86 = arith.constant 0 : index
    %c0_87 = arith.constant 0 : index
    %243 = vector.load %arg12[%c0_85, %c0_86, %c0_87] : memref<1x1x128xf32, #tpu.memory_space<vmem>>, vector<1x1x128xf32>
    %244 = vector.shape_cast %243 : vector<1x1x128xf32> to vector<1x128xf32>
    %245 = vector.broadcast %244 : vector<1x128xf32> to vector<16x128xf32>
    %246 = arith.addf %242, %245 : vector<16x128xf32>
    %247 = arith.mulf %246, %246 : vector<16x128xf32>
    %248 = arith.mulf %246, %247 : vector<16x128xf32>
    %cst_88 = arith.constant 4.471500e-02 : f32
    %249 = vector.broadcast %cst_88 : f32 to vector<16x128xf32>
    %250 = arith.mulf %249, %248 : vector<16x128xf32>
    %251 = arith.addf %246, %250 : vector<16x128xf32>
    %cst_89 = arith.constant 0.797884583 : f32
    %252 = vector.broadcast %cst_89 : f32 to vector<16x128xf32>
    %253 = arith.mulf %252, %251 : vector<16x128xf32>
    %254 = math.tanh %253 : vector<16x128xf32>
    %cst_90 = arith.constant 1.000000e+00 : f32
    %255 = vector.broadcast %cst_90 : f32 to vector<16x128xf32>
    %256 = arith.addf %255, %254 : vector<16x128xf32>
    %cst_91 = arith.constant 5.000000e-01 : f32
    %257 = vector.broadcast %cst_91 : f32 to vector<16x128xf32>
    %258 = arith.mulf %257, %256 : vector<16x128xf32>
    %259 = arith.mulf %246, %258 : vector<16x128xf32>
    %c0_92 = arith.constant 0 : index
    %c0_93 = arith.constant 0 : index
    %c0_94 = arith.constant 0 : index
    %260 = vector.load %arg13[%c0_92, %c0_93, %c0_94] : memref<1x128x32xf32, #tpu.memory_space<vmem>>, vector<1x128x32xf32>
    %261 = vector.shape_cast %260 : vector<1x128x32xf32> to vector<128x32xf32>
    %cst_95 = arith.constant dense<0.000000e+00> : vector<16x32xf32>
    %262 = tpu.matmul %259, %261, %cst_95 {dimension_numbers = #tpu.dot_dimension_numbers<[1], [0], [0], [1], [0, 0, 1, 1], [], []>} : vector<16x128xf32>, vector<128x32xf32>, vector<16x32xf32> -> vector<16x32xf32>
    %c0_96 = arith.constant 0 : index
    %c0_97 = arith.constant 0 : index
    %c0_98 = arith.constant 0 : index
    %263 = vector.load %arg14[%c0_96, %c0_97, %c0_98] : memref<1x1x32xf32, #tpu.memory_space<vmem>>, vector<1x1x32xf32>
    %264 = vector.shape_cast %263 : vector<1x1x32xf32> to vector<1x32xf32>
    %265 = vector.broadcast %264 : vector<1x32xf32> to vector<16x32xf32>
    %266 = arith.addf %262, %265 : vector<16x32xf32>
    %267 = arith.addf %213, %266 : vector<16x32xf32>
    %c0_99 = arith.constant 0 : index
    %c0_100 = arith.constant 0 : index
    %268 = vector.load %arg18[%c0_99, %c0_100] : memref<16x32xf32, #tpu.memory_space<vmem>>, vector<16x32xf32>
    tpu.vector_store %arg18[%c0_99, %c0_100], %267 {strides = array<i32>} : memref<16x32xf32, #tpu.memory_space<vmem>>, vector<16x32xf32>,
    %c1_i32 = arith.constant 1 : i32
    %269 = arith.cmpi eq, %arg0, %c1_i32 : i32
    %270 = arith.extui %269 : i1 to i32
    %c0_i32_101 = arith.constant 0 : i32
    %271 = arith.cmpi ne, %270, %c0_i32_101 : i32
    scf.if %271 {
      %c0_102 = arith.constant 0 : index
      %c0_103 = arith.constant 0 : index
      %272 = vector.load %arg15[%c0_102, %c0_103] : memref<1x32xf32, #tpu.memory_space<vmem>>, vector<1x32xf32>
      %c0_104 = arith.constant 0 : index
      %c0_105 = arith.constant 0 : index
      %273 = vector.load %arg16[%c0_104, %c0_105] : memref<1x32xf32, #tpu.memory_space<vmem>>, vector<1x32xf32>
      %cst_106 = arith.constant dense<0.000000e+00> : vector<16xf32>
      %274 = vector.multi_reduction <add>, %267, %cst_106 [1] : vector<16x32xf32> to vector<16xf32>
      %275 = vector.shape_cast %274 : vector<16xf32> to vector<16x1xf32>
      %cst_107 = arith.constant 3.200000e+01 : f32
      %276 = vector.broadcast %cst_107 : f32 to vector<16x1xf32>
      %277 = arith.divf %275, %276 : vector<16x1xf32>
      %278 = vector.broadcast %277 : vector<16x1xf32> to vector<16x32xf32>
      %279 = arith.subf %267, %278 : vector<16x32xf32>
      %280 = arith.mulf %279, %279 : vector<16x32xf32>
      %cst_108 = arith.constant dense<0.000000e+00> : vector<16xf32>
      %281 = vector.multi_reduction <add>, %280, %cst_108 [1] : vector<16x32xf32> to vector<16xf32>
      %282 = vector.shape_cast %281 : vector<16xf32> to vector<16x1xf32>
      %cst_109 = arith.constant 3.200000e+01 : f32
      %283 = vector.broadcast %cst_109 : f32 to vector<16x1xf32>
      %284 = arith.divf %282, %283 : vector<16x1xf32>
      %285 = vector.broadcast %277 : vector<16x1xf32> to vector<16x32xf32>
      %286 = arith.subf %267, %285 : vector<16x32xf32>
      %cst_110 = arith.constant 9.99999996E-13 : f32
      %287 = vector.broadcast %cst_110 : f32 to vector<16x1xf32>
      %288 = arith.addf %284, %287 : vector<16x1xf32>
      %289 = math.rsqrt %288 : vector<16x1xf32>
      %290 = vector.broadcast %289 : vector<16x1xf32> to vector<16x32xf32>
      %291 = arith.mulf %286, %290 : vector<16x32xf32>
      %292 = vector.broadcast %272 : vector<1x32xf32> to vector<16x32xf32>
      %293 = arith.mulf %291, %292 : vector<16x32xf32>
      %294 = vector.broadcast %273 : vector<1x32xf32> to vector<16x32xf32>
      %295 = arith.addf %293, %294 : vector<16x32xf32>
      %c0_111 = arith.constant 0 : index
      %c0_112 = arith.constant 0 : index
      %296 = vector.load %arg17[%c0_111, %c0_112] : memref<16x32xf32, #tpu.memory_space<vmem>>, vector<16x32xf32>
      tpu.vector_store %arg17[%c0_111, %c0_112], %295 {strides = array<i32>} : memref<16x32xf32, #tpu.memory_space<vmem>>, vector<16x32xf32>,
    } else {
    }
    return
  }
  func.func @transform_0(%arg0: i32) -> (i32, i32) {
    %c0_i32 = arith.constant 0 : i32
    %c0_i32_0 = arith.constant 0 : i32
    %c0_i32_1 = arith.constant 0 : i32
    return %c0_i32, %c0_i32_0 : i32, i32
  }
  func.func @transform_1(%arg0: i32) -> (i32, i32) {
    %c0_i32 = arith.constant 0 : i32
    %c0_i32_0 = arith.constant 0 : i32
    %c0_i32_1 = arith.constant 0 : i32
    return %c0_i32, %c0_i32_0 : i32, i32
  }
  func.func @transform_2(%arg0: i32) -> (i32, i32, i32) {
    %c0_i32 = arith.constant 0 : i32
    %c0_i32_0 = arith.constant 0 : i32
    %c0_i32_1 = arith.constant 0 : i32
    return %arg0, %c0_i32, %c0_i32_0 : i32, i32, i32
  }
  func.func @transform_3(%arg0: i32) -> (i32, i32, i32) {
    %c0_i32 = arith.constant 0 : i32
    %c0_i32_0 = arith.constant 0 : i32
    %c0_i32_1 = arith.constant 0 : i32
    return %arg0, %c0_i32, %c0_i32_0 : i32, i32, i32
  }
  func.func @transform_4(%arg0: i32) -> (i32, i32, i32) {
    %c0_i32 = arith.constant 0 : i32
    %c0_i32_0 = arith.constant 0 : i32
    %c0_i32_1 = arith.constant 0 : i32
    return %arg0, %c0_i32, %c0_i32_0 : i32, i32, i32
  }
  func.func @transform_5(%arg0: i32) -> (i32, i32, i32) {
    %c0_i32 = arith.constant 0 : i32
    %c0_i32_0 = arith.constant 0 : i32
    %c0_i32_1 = arith.constant 0 : i32
    return %arg0, %c0_i32, %c0_i32_0 : i32, i32, i32
  }
  func.func @transform_6(%arg0: i32) -> (i32, i32, i32) {
    %c0_i32 = arith.constant 0 : i32
    %c0_i32_0 = arith.constant 0 : i32
    %c0_i32_1 = arith.constant 0 : i32
    return %arg0, %c0_i32, %c0_i32_0 : i32, i32, i32
  }
  func.func @transform_7(%arg0: i32) -> (i32, i32, i32) {
    %c0_i32 = arith.constant 0 : i32
    %c0_i32_0 = arith.constant 0 : i32
    %c0_i32_1 = arith.constant 0 : i32
    return %arg0, %c0_i32, %c0_i32_0 : i32, i32, i32
  }
  func.func @transform_8(%arg0: i32) -> (i32, i32, i32) {
    %c0_i32 = arith.constant 0 : i32
    %c0_i32_0 = arith.constant 0 : i32
    %c0_i32_1 = arith.constant 0 : i32
    return %arg0, %c0_i32, %c0_i32_0 : i32, i32, i32
  }
  func.func @transform_9(%arg0: i32) -> (i32, i32, i32) {
    %c0_i32 = arith.constant 0 : i32
    %c0_i32_0 = arith.constant 0 : i32
    %c0_i32_1 = arith.constant 0 : i32
    return %arg0, %c0_i32, %c0_i32_0 : i32, i32, i32
  }
  func.func @transform_10(%arg0: i32) -> (i32, i32, i32) {
    %c0_i32 = arith.constant 0 : i32
    %c0_i32_0 = arith.constant 0 : i32
    %c0_i32_1 = arith.constant 0 : i32
    return %arg0, %c0_i32, %c0_i32_0 : i32, i32, i32
  }
  func.func @transform_11(%arg0: i32) -> (i32, i32, i32) {
    %c0_i32 = arith.constant 0 : i32
    %c0_i32_0 = arith.constant 0 : i32
    %c0_i32_1 = arith.constant 0 : i32
    return %arg0, %c0_i32, %c0_i32_0 : i32, i32, i32
  }
  func.func @transform_12(%arg0: i32) -> (i32, i32, i32) {
    %c0_i32 = arith.constant 0 : i32
    %c0_i32_0 = arith.constant 0 : i32
    %c0_i32_1 = arith.constant 0 : i32
    return %arg0, %c0_i32, %c0_i32_0 : i32, i32, i32
  }
  func.func @transform_13(%arg0: i32) -> (i32, i32, i32) {
    %c0_i32 = arith.constant 0 : i32
    %c0_i32_0 = arith.constant 0 : i32
    %c0_i32_1 = arith.constant 0 : i32
    return %arg0, %c0_i32, %c0_i32_0 : i32, i32, i32
  }
  func.func @transform_14(%arg0: i32) -> (i32, i32) {
    %c0_i32 = arith.constant 0 : i32
    %c0_i32_0 = arith.constant 0 : i32
    %c0_i32_1 = arith.constant 0 : i32
    return %c0_i32, %c0_i32_0 : i32, i32
  }
  func.func @transform_15(%arg0: i32) -> (i32, i32) {
    %c0_i32 = arith.constant 0 : i32
    %c0_i32_0 = arith.constant 0 : i32
    %c0_i32_1 = arith.constant 0 : i32
    return %c0_i32, %c0_i32_0 : i32, i32
  }
  func.func @transform_16(%arg0: i32) -> (i32, i32) {
    %c0_i32 = arith.constant 0 : i32
    %c0_i32_0 = arith.constant 0 : i32
    %c0_i32_1 = arith.constant 0 : i32
    return %c0_i32, %c0_i32_0 : i32, i32
  }
}

</mosaic_0001>

<bundles_post_ra>
// kernel: tpu_custom_call.1
= control target key start
LH: loop header
LB: loop body
LE: loop exit
PB: predicated region body
PF: predicated region fallthrough
CT: control target
= control target key end

     0   :  { %s3689_s0 = inlined_call_operand.vmem [shape: s32[2,8], index: 0, kind: input, shape index: {}]   ;;  %s3690_s1 = inlined_call_operand.vmem [shape: f32[16,32], index: 1, kind: input, shape index: {}]   ;;  %s3691_s2 = inlined_call_operand.vmem [shape: f32[2,1,32], index: 2, kind: input, shape index: {}]   ;;  %s3692_s3 = inlined_call_operand.vmem [shape: f32[2,1,32], index: 3, kind: input, shape index: {}]   ;;  %s3693_s4 = inlined_call_operand.vmem [shape: f32[2,32,96], index: 4, kind: input, shape index: {}]   ;;  %s3694_s5 = inlined_call_operand.vmem [shape: f32[2,1,96], index: 5, kind: input, shape index: {}]   ;;  %s3695_s6 = inlined_call_operand.vmem [shape: f32[2,32,32], index: 6, kind: input, shape index: {}]   ;;  %s3696_s7 = inlined_call_operand.vmem [shape: f32[2,1,32], index: 7, kind: input, shape index: {}]   ;;  %s3697_s8 = inlined_call_operand.vmem [shape: f32[2,1,32], index: 8, kind: input, shape index: {}]   ;;  %s3698_s9 = inlined_call_operand.vmem [shape: f32[2,1,32], index: 9, kind: input, shape index: {}]   ;;  %s3699_s10 = inlined_call_operand.vmem [shape: f32[2,32,128], index: 10, kind: input, shape index: {}]   ;;  %s3700_s11 = inlined_call_operand.vmem [shape: f32[2,1,128], index: 11, kind: input, shape index: {}]   ;;  %s3701_s12 = inlined_call_operand.vmem [shape: f32[2,128,32], index: 12, kind: input, shape index: {}]   ;;  %s3702_s13 = inlined_call_operand.vmem [shape: f32[2,1,32], index: 13, kind: input, shape index: {}]   ;;  %s3703_s14 = inlined_call_operand.vmem [shape: f32[1,32], index: 14, kind: input, shape index: {}]   ;;  %s3704_s15 = inlined_call_operand.vmem [shape: f32[1,32], index: 15, kind: input, shape index: {}]   ;;  %s3705_s16 = inlined_call_operand.hbm [shape: f32[16,32], index: 16, kind: output, shape index: {}]  }
   0x1   :  { %3709 = sst [smem:[#allocation8_spill]] %s3689_s0 }
   0x2   :  { %3710 = sst [smem:[#allocation9_spill]] %s3693_s4 }
   0x3   :  { %3711 = sst [smem:[#allocation10_spill]] %s3695_s6 }
   0x4   :  { %3712 = sst [smem:[#allocation11_spill]] %s3703_s14 }
   0x5   :  { %3713 = sst [smem:[#allocation12_spill]] %s3704_s15 }
   0x6   :  { %3714 = sst [smem:[#allocation13_spill]] %s3705_s16 }
   0x7   :  { %21 = vsyncpa [#allocation4], 0  ;;  %s3318_s21 = smov 0  }
   0x8 LB: > { %3715 = sst [smem:[#allocation6_spill]] %s3213_s21  ;;  %s3324_s22 = sadd.s32 4294967295, %s3213_s21   ;;  %s3213_s21 = sphi %s3318_s21, %s27_s21  }
   0x9   : > { %p2766_p0 = scmp.ge.s32.totalorder %s3213_s21, 1  ;;  %p552_p1 = scmp.lt.s32.totalorder %s3213_s21, 3 }
   0xb   : > { %p553_p2 = pnand %p2766_p0, %p552_p1 }
   0xd   : > { %556 = sbr.rel (%p553_p2) target bundleno = 2957 (0xb8d), region = 84 }
  0x14   : > { %p636_p3 = scmp.lt.s32.totalorder %s3324_s22, 1  ;;  %s3716_s4 = sld [smem:[#allocation9_spill]] }
  0x15   : > { %s3717_s6 = sld [smem:[#allocation10_spill]]  ;;  %p2775_p4 = scmp.ne.s32.totalorder %s3324_s22, 0 }
  0x16   : > { %s3330_s23 = scalar_select %p636_p3, %s3324_s22, 1 }
  0x17   : > { %683 = sbr.rel (%p2775_p4) target bundleno = 30 (0x1e), region = 88  ;;  %v684_v0 = vld [vmem:[%s3690_s1] sm:$0xff] (!%p2775_p4)  ;;  %vm686_vm0 = vcmask (!%p2775_p4), 261120   ;;  %v685_v1 = vld [vmem:[%s3690_s1 + $0x8] sm:$0xff] (!%p2775_p4) }
  0x18   : > { %s2821_s30 = sshll.u32 %s3330_s23, 5  ;;  %s660_s14 = scalar_lea.vmem %s3697_s8, %s3330_s23  ;;  %687 = vst.msk [vmem:[#allocation2] sm:$0xff] (!%p2775_p4), %vm686_vm0, %v684_v0  ;;  %688 = vst.msk [vmem:[#allocation2 + $0x8] sm:$0xff] (!%p2775_p4), %vm686_vm0, %v685_v1 }
  0x19   : > { %s663_s18 = scalar_lea.vmem %s3698_s9, %s3330_s23  ;;  %s679_s0 = scalar_lea.vmem %s3702_s13, %s3330_s23 }
  0x1a   : > { %s3348_s24 = scalar_lea.vmem %s3716_s4, %s2821_s30  ;;  %s3370_s4 = scalar_lea.vmem %s3699_s10, %s2821_s30 }
  0x1b   : > { %s3353_s16 = scalar_lea.vmem %s3717_s6, %s2821_s30  ;;  %s671_s6 = scalar_lea.vmem %s3700_s11, %s3330_s23 }
  0x1c   : > { %3718 = sst [smem:[#allocation7_spill]] %s3353_s16  ;;  %s2824_s16 = sshll.u32 %s3330_s23, 7 }
  0x1d   : > { %s3380_s27 = scalar_lea.vmem %s3701_s12, %s2824_s16 }
  0x1e PF: > { %vm696_vm1 = vcmask 261120   ;;  %v740_v16 = vld [vmem:[%s3348_s24] sm:$0xff]  ;;  %v741_v17 = vld [vmem:[%s3348_s24 + $0x8] sm:$0xff]  ;;  %v742_v18 = vld [vmem:[%s3348_s24 + $0x10] sm:$0xff]  ;;  %s3719_s25 = scalar_lea.vmem %s3691_s2, %s3330_s23  ;;  %s3720_s26 = scalar_lea.vmem %s3692_s3, %s3330_s23  ;;  %v3215_v38 = vmov 0.0   ;;  %vm3216_vm2 = vmmov 0   ;;  %v911_v58 = vlaneseq }
  0x1f   : > { %v3393_v2 = vld [vmem:[#allocation2] sm:$0xff]  ;;  %v3395_v3 = vld [vmem:[#allocation2 + $0x8] sm:$0xff]  ;;  %v3041_v19 = vpack.c.bf16 %v741_v17, %v740_v16  ;;  %v743_v20 = vld [vmem:[%s3348_s24 + $0x18] sm:$0xff]  ;;  %2914 = vmatprep.subr.mxu0 %v3215_v38  ;;  %2916 = vmatprep.mubr.msk.f32.mxu0 %vm3216_vm2, %v3215_v38  ;;  %s3721_s17 = scalar_lea.vmem %s3694_s5, %s3330_s23  ;;  %s3217_s30 = smov 88   ;;  %vm835_vm3 = vcmask 64512   ;;  %vm1517_vm5 = vcmask 130048  }
  0x20   : > { %v697_v4 = vsel %vm696_vm1, %v3393_v2, 0.0  ;;  %v700_v5 = vsel %vm696_vm1, %v3395_v3, 0.0  ;;  %v3045_v21 = vpack.c.bf16 %v743_v20, %v742_v18  ;;  %v2776_v29 = vld [vmem:[%s3719_s25] ss:$0 sm:$0xff]  ;;  %s3218_s19 = smov 96   ;;  %s3219_s20 = smov 120  }
  0x21   : > { %698 = vadd.xlane.f32.xlu0 %v697_v4  ;;  %3042 = vmatprep.subr.bf16.mxu1 %v3041_v19  ;;  %v2777_v31 = vld [vmem:[%s3720_s26] ss:$0 sm:$0xff]  ;;  %s3220_s16 = smov 112   ;;  %s3221_s21 = smov 80   ;;  %v912_v60 = vshrl.u32 %v911_v58, 7  ;;  %vm1519_vm6 = vcmask 195584  }
  0x22   : > { %3044 = vmatpush3.bf16.msra.mxu1 %v3041_v19  ;;  %v2778_v39 = vld [vmem:[%s3721_s17] ss:$0 sm:$0xff]  ;;  %s3222_s25 = smov 104   ;;  %s3223_s24 = smov 72  }
  0x23   : > { %3046 = vmatprep.subr.bf16.mxu1 %v3045_v21  ;;  %s3722_s29 = sld [smem:[#allocation8_spill]]  ;;  %v913_v61 = vsub.s32 0, %v912_v60  ;;  %v1601_v16 = vsub.s32 1, %v912_v60  ;;  %s3224_s28 = smov 64  }
  0x24   : > { %s3225_s17 = smov 48   ;;  %s3724_s26 = scalar_lea.vmem %s3696_s7, %s3330_s23 }
  0x25   : > { %701 = vadd.xlane.f32.xlu0 %v700_v5  ;;  %p2814_p5 = scmp.ne.s32.totalorder %s3324_s22, 1 }
  0x26   : > { %3048 = vmatpush3.bf16.msra.mxu1 %v3045_v21 }
  0x27   : > { %2904 = vmatprep.subr.mxu1 %v3215_v38 }
  0x29   : > { %v691_v59 = vld [vmem:[%s3722_s29] sm:$0x3] }
  0x2a   : > { %vm692_vm4 = vcmp.eq.s32.totalorder %v691_v59, 21 }
  0x2b   : > { %v693_v62 = vsel %vm692_vm4, -1e+09, %v3215_v38 }
  0x2c   : > { %v914_v63 = vrot.slane %v693_v62, %v913_v61 }
  0xae   : > { %v699_v6 = vpop.xlane.xlu0 %698 }
  0xaf   : > { %v704_v7 = vmul.f32 0.03125, %v699_v6 }
  0xb1   : > { %v706_v8 = vsub.f32 %v3393_v2, %v704_v7 }
  0xb2   : > { %v702_v9 = vpop.xlane.xlu0 %701 }
  0xb3   : > { %v705_v10 = vmul.f32 0.03125, %v702_v9  ;;  %v708_v11 = vmul.f32 %v706_v8, %v706_v8 }
  0xb5   : > { %v707_v12 = vsub.f32 %v3395_v3, %v705_v10  ;;  %v710_v13 = vsel %vm696_vm1, %v708_v11, 0.0 }
  0xb6   : > { %711 = vadd.xlane.f32.xlu1 %v710_v13 }
  0xb7   : > { %v709_v14 = vmul.f32 %v707_v12, %v707_v12 }
  0xb9   : > { %v713_v15 = vsel %vm696_vm1, %v709_v14, 0.0 }
  0xba   : > { %714 = vadd.xlane.f32.xlu1 %v713_v15 }
 0x143   : > { %v712_v22 = vpop.xlane.xlu1 %711 }
 0x144   : > { %v716_v23 = vmul.f32 0.03125, %v712_v22  ;;  %v1602_v22 = vrot.slane %v693_v62, %v1601_v16 }
 0x146   : > { %v718_v24 = vadd.f32 1e-12, %v716_v23 }
 0x147   : > { %v715_v25 = vpop.xlane.xlu1 %714 }
 0x148   : > { %3129 = vrsqrt.f32 %v718_v24  ;;  %v717_v26 = vmul.f32 0.03125, %v715_v25 }
 0x14a   : > { %v719_v27 = vadd.f32 1e-12, %v717_v26 }
 0x14c   : > { %3131 = vrsqrt.f32 %v719_v27 }
 0x152   : > { %v3130_v28 = vpop.eup %3129 }
 0x153   : > { %v722_v30 = vmul.f32 %v3130_v28, %v706_v8 }
 0x155   : > { %v730_v32 = vmul.f32 %v2776_v29, %v722_v30 }
 0x156   : > { %v3132_v33 = vpop.eup %3131 }
 0x157   : > { %v723_v34 = vmul.f32 %v3132_v33, %v707_v12  ;;  %v738_v35 = vadd.f32 %v2777_v31, %v730_v32 }
 0x159   : > { %v731_v36 = vmul.f32 %v2776_v29, %v723_v34  ;;  %2901 = vmatprep.mubr.msk.f32.mxu1 %vm696_vm1, %v738_v35 }
 0x15b   : > { %v739_v37 = vadd.f32 %v2777_v31, %v731_v36 }
 0x15d   : > { %2902 = vmatmul.mubr.msk.f32.vlgmr.msra.gmra.mrb[0].mxu1 %vm696_vm1, %v739_v37 }
 0x15e   : > { %2906 = vmatprep.mubr.msk.f32.mxu1 %vm3216_vm2, %v3215_v38 }
 0x230   : > { %v2903_v40 = vpop.f32.mrb[0].mxu1 }
 0x231   : > { %v823_v41 = vpop.f32.mrb[1].mxu1  ;;  %v3440_v43 = vadd.f32 %v2903_v40, %v2778_v39 }
 0x232   : > { %v3432_v42 = vadd.f32 %v2778_v39, %v823_v41 }
 0x234   : > { %1005 = vrot.lane.b32.xlu1 %v3432_v42, %s3217_s30  ;;  %833 = vrot.lane.b32.xlu0 %v3432_v42, %s3218_s19 }
 0x238   : > { %1003 = vrot.lane.b32.xlu1 %v3432_v42, %s3219_s20  ;;  %1170 = vrot.lane.b32.xlu0 %v3432_v42, %s3220_s16 }
 0x23c   : > { %1172 = vrot.lane.b32.xlu1 %v3432_v42, %s3221_s21  ;;  %1337 = vrot.lane.b32.xlu0 %v3432_v42, %s3222_s25 }
 0x240   : > { %1339 = vrot.lane.b32.xlu1 %v3432_v42, %s3223_s24  ;;  %1693 = vrot.lane.b32.xlu0 %v3440_v43, %s3217_s30  ;;  %s3226_s30 = smov 40  }
 0x244   : > { %1522 = vrot.lane.b32.xlu1 %v3440_v43, %s3218_s19  ;;  %1860 = vrot.lane.b32.xlu0 %v3440_v43, %s3221_s21  ;;  %s3227_s19 = smov 56   ;;  %s3229_s21 = smov 16  }
 0x248   : > { %1691 = vrot.lane.b32.xlu1 %v3440_v43, %s3219_s20  ;;  %2027 = vrot.lane.b32.xlu0 %v3440_v43, %s3223_s24  ;;  %s3723_s20 = sld [smem:[#allocation7_spill]] }
 0x24c   : > { %1858 = vrot.lane.b32.xlu1 %v3440_v43, %s3220_s16  ;;  %s3228_s16 = smov 8  }
 0x250   : > { %2025 = vrot.lane.b32.xlu1 %v3440_v43, %s3222_s25  ;;  %s3230_s25 = smov 24  }
 0x2a6   : > { %v1006_v44 = vpop.permute.xlu1 %1005  ;;  %v834_v45 = vpop.permute.xlu0 %833 }
 0x2a7   : > { %2905 = vmatpush3.xpose.msk.msra.mxu1 %vm835_vm3, %v834_v45  ;;  %2915 = vmatpush3.xpose.msk.msra.mxu0 %vm835_vm3, %v1006_v44 }
 0x2a8   : > { %2924 = vmatprep.subr.mxu0 %v3215_v38  ;;  %2909 = vmatprep.subr.mxu1 %v3215_v38 }
 0x2aa   : > { %v1004_v46 = vpop.permute.xlu1 %1003  ;;  %2907 = vmatmul.mubr.msk.f32.vlgmr.msra.gmra.mrb[2].mxu1 %vm835_vm3, %v3432_v42  ;;  %v1171_v47 = vpop.permute.xlu0 %1170 }
 0x2ab   : > { %2917 = vmatmul.mubr.msk.f32.vlgmr.msra.gmra.mrb[0].mxu0 %vm835_vm3, %v1004_v46  ;;  %2911 = vmatprep.mubr.msk.f32.mxu1 %vm3216_vm2, %v3215_v38 }
 0x2ac   : > { %2926 = vmatprep.mubr.msk.f32.mxu0 %vm3216_vm2, %v3215_v38 }
 0x2ae   : > { %v1173_v48 = vpop.permute.xlu1 %1172  ;;  %v1338_v49 = vpop.permute.xlu0 %1337 }
 0x2af   : > { %2925 = vmatpush3.xpose.msk.msra.mxu0 %vm835_vm3, %v1173_v48 }
 0x2b0   : > { %2934 = vmatprep.subr.mxu0 %v3215_v38 }
 0x2b2   : > { %v1340_v50 = vpop.permute.xlu1 %1339  ;;  %2927 = vmatmul.mubr.msk.f32.vlgmr.msra.gmra.mrb[2].mxu0 %vm835_vm3, %v1171_v47  ;;  %v1694_v51 = vpop.permute.xlu0 %1693 }
 0x2b3   : > { %2935 = vmatpush3.xpose.msk.msra.mxu0 %vm835_vm3, %v1340_v50  ;;  %2936 = vmatprep.mubr.msk.f32.mxu0 %vm3216_vm2, %v3215_v38 }
 0x2b4   : > { %2944 = vmatprep.subr.mxu0 %v3215_v38 }
 0x2b6   : > { %v1523_v52 = vpop.permute.xlu1 %1522  ;;  %2937 = vmatmul.mubr.msk.f32.vlgmr.msra.gmra.mrb[4].mxu0 %vm835_vm3, %v1338_v49  ;;  %v1861_v54 = vpop.permute.xlu0 %1860 }
 0x2b7   : > { %2945 = vmatpush3.xpose.msk.msra.mxu0 %vm835_vm3, %v1523_v52  ;;  %2946 = vmatprep.mubr.msk.f32.mxu0 %vm3216_vm2, %v3215_v38 }
 0x2b8   : > { %2954 = vmatprep.subr.mxu0 %v3215_v38 }
 0x2ba   : > { %v1692_v53 = vpop.permute.xlu1 %1691  ;;  %2947 = vmatmul.mubr.msk.f32.vlgmr.msra.gmra.mrb[6].mxu0 %vm835_vm3, %v3440_v43  ;;  %v2028_v56 = vpop.permute.xlu0 %2027 }
 0x2bb   : > { %2955 = vmatpush3.xpose.msk.msra.mxu0 %vm835_vm3, %v1694_v51  ;;  %2956 = vmatprep.mubr.msk.f32.mxu0 %vm3216_vm2, %v3215_v38 }
 0x2bc   : > { %2964 = vmatprep.subr.mxu0 %v3215_v38 }
 0x2be   : > { %2957 = vmatmul.mubr.msk.f32.vlgmr.msra.gmra.mrb[8].mxu0 %vm835_vm3, %v1692_v53  ;;  %v1859_v55 = vpop.permute.xlu1 %1858 }
 0x2bf   : > { %2965 = vmatpush3.xpose.msk.msra.mxu0 %vm835_vm3, %v1861_v54  ;;  %2966 = vmatprep.mubr.msk.f32.mxu0 %vm3216_vm2, %v3215_v38 }
 0x2c0   : > { %2974 = vmatprep.subr.mxu0 %v3215_v38 }
 0x2c2   : > { %2967 = vmatmul.mubr.msk.f32.vlgmr.msra.gmra.mrb[10].mxu0 %vm835_vm3, %v1859_v55  ;;  %v2026_v57 = vpop.permute.xlu1 %2025 }
 0x2c3   : > { %2975 = vmatpush3.xpose.msk.msra.mxu0 %vm835_vm3, %v2028_v56  ;;  %2976 = vmatprep.mubr.msk.f32.mxu0 %vm3216_vm2, %v3215_v38 }
 0x2c6   : > { %2977 = vmatmul.mubr.msk.f32.vlgmr.msra.gmra.mrb[12].mxu0 %vm835_vm3, %v2026_v57 }
 0x37d   : > { %v906_v0 = vpop.f32.mrb[2].mxu1 }
 0x37e   : > { %v910_v1 = vmul.f32 0.35355338, %v906_v0  ;;  %v2908_v4 = vpop.f32.mrb[3].mxu1  ;;  %v1077_v5 = vpop.f32.mrb[0].mxu0 }
 0x37f   : > { %v1081_v6 = vmul.f32 0.35355338, %v1077_v5  ;;  %v2918_v7 = vpop.f32.mrb[1].mxu0 }
 0x380   : > { %v915_v8 = vadd.f32 %v914_v63, %v910_v1 }
 0x381   : > { %v1082_v9 = vadd.f32 %v1081_v6, %v914_v63 }
 0x382   : > { %v916_v10 = vsel %vm835_vm3, %v915_v8, -inf }
 0x383   : > { %917 = vmax.xlane.f32.xlu0 %v916_v10  ;;  %v1083_v11 = vsel %vm835_vm3, %v1082_v9, -inf }
 0x384   : > { %1084 = vmax.xlane.f32.xlu1 %v1083_v11 }
 0x385   : > { %v1244_v12 = vpop.f32.mrb[2].mxu0 }
 0x386   : > { %v1248_v13 = vmul.f32 0.35355338, %v1244_v12  ;;  %v2928_v14 = vpop.f32.mrb[3].mxu0 }
 0x388   : > { %v3495_v15 = vadd.f32 %v1248_v13, %v914_v63 }
 0x389   : > { %v1411_v17 = vpop.f32.mrb[4].mxu0 }
 0x38a   : > { %v1415_v18 = vmul.f32 0.35355338, %v1411_v17  ;;  %v2938_v19 = vpop.f32.mrb[5].mxu0  ;;  %v1250_v20 = vsel %vm835_vm3, %v3495_v15, -inf }
 0x38b   : > { %1251 = vmax.xlane.f32.xlu0 %v1250_v20 }
 0x38c   : > { %v1416_v21 = vadd.f32 %v1415_v18, %v914_v63 }
 0x38d   : > { %v1594_v23 = vpop.f32.mrb[6].mxu0 }
 0x38e   : > { %v1598_v24 = vmul.f32 0.35355338, %v1594_v23  ;;  %v2948_v25 = vpop.f32.mrb[7].mxu0  ;;  %v1417_v26 = vsel %vm835_vm3, %v1416_v21, -inf }
 0x38f   : > { %1418 = vmax.xlane.f32.xlu0 %v1417_v26 }
 0x390   : > { %v3500_v27 = vadd.f32 %v1602_v22, %v1598_v24 }
 0x391   : > { %v1765_v28 = vpop.f32.mrb[8].mxu0 }
 0x392   : > { %v1769_v29 = vmul.f32 0.35355338, %v1765_v28  ;;  %v2958_v30 = vpop.f32.mrb[9].mxu0  ;;  %v1604_v31 = vsel %vm835_vm3, %v3500_v27, -inf }
 0x393   : > { %1605 = vmax.xlane.f32.xlu0 %v1604_v31 }
 0x394   : > { %v1770_v32 = vadd.f32 %v1769_v29, %v1602_v22 }
 0x395   : > { %v1932_v33 = vpop.f32.mrb[10].mxu0 }
 0x396   : > { %v1936_v34 = vmul.f32 0.35355338, %v1932_v33  ;;  %v2968_v35 = vpop.f32.mrb[11].mxu0  ;;  %v1771_v36 = vsel %vm835_vm3, %v1770_v32, -inf }
 0x397   : > { %1772 = vmax.xlane.f32.xlu1 %v1771_v36 }
 0x398   : > { %v1937_v37 = vadd.f32 %v1936_v34, %v1602_v22 }
 0x399   : > { %v2099_v39 = vpop.f32.mrb[12].mxu0 }
 0x39a   : > { %v2978_v40 = vpop.f32.mrb[13].mxu0  ;;  %v1938_v41 = vsel %vm835_vm3, %v1937_v37, -inf  ;;  %v2103_v44 = vmul.f32 0.35355338, %v2099_v39 }
 0x39b   : > { %1939 = vmax.xlane.f32.xlu0 %v1938_v41 }
 0x39c   : > { %v2104_v45 = vadd.f32 %v2103_v44, %v1602_v22 }
 0x39e   : > { %v2105_v46 = vsel %vm835_vm3, %v2104_v45, -inf }
 0x3a8   : > { %927 = vrot.lane.b32.xlu1 %v3432_v42, %s3224_s28 }
 0x3cc   : > { %2106 = vmax.xlane.f32.xlu1 %v2105_v46 }
 0x3dd   : > { %1261 = vrot.lane.b32.xlu1 %v3432_v42, %s3225_s17 }
 0x3e1   : > { %1428 = vrot.lane.b32.xlu1 %v3432_v42, %s3226_s30 }
 0x3e5   : > { %1615 = vrot.lane.b32.xlu1 %v3440_v43, %s3224_s28 }
 0x410   : > { %v918_v47 = vpop.xlane.xlu0 %917 }
 0x411   : > { %v919_v48 = vsub.f32 %v915_v8, %v918_v47  ;;  %v1085_v49 = vpop.xlane.xlu1 %1084 }
 0x412   : > { %v1086_v50 = vsub.f32 %v1082_v9, %v1085_v49 }
 0x413   : > { %v920_v51 = vmul.f32 1.442695, %v919_v48 }
 0x414   : > { %v1087_v52 = vmul.f32 1.442695, %v1086_v50 }
 0x415   : > { %3133 = vpow2.f32 %v920_v51 }
 0x416   : > { %3135 = vpow2.f32 %v1087_v52 }
 0x418   : > { %v1252_v53 = vpop.xlane.xlu0 %1251 }
 0x419   : > { %v1253_v1 = vsub.f32 %v3495_v15, %v1252_v53 }
 0x41b   : > { %v1254_v5 = vmul.f32 1.442695, %v1253_v1 }
 0x41c   : > { %v1419_v54 = vpop.xlane.xlu0 %1418 }
 0x41d   : > { %v1420_v55 = vsub.f32 %v1416_v21, %v1419_v54 }
 0x41f   : > { %v3134_v56 = vpop.eup %3133  ;;  %v1421_v57 = vmul.f32 1.442695, %v1420_v55 }
 0x420   : > { %v3513_v58 = vpop.eup %3135  ;;  %v922_v59 = vsel %vm835_vm3, %v3134_v56, 0.0  ;;  %v1606_v4 = vpop.xlane.xlu0 %1605 }
 0x421   : > { %3137 = vpow2.f32 %v1421_v57  ;;  %923 = vadd.xlane.f32.xlu0 %v922_v59  ;;  %v1089_v60 = vsel %vm835_vm3, %v3513_v58, 0.0  ;;  %v1607_v6 = vsub.f32 %v3500_v27, %v1606_v4  ;;  %v2209_v4 = vld [vmem:[%s3723_s20 + $0x10] sm:$0xff] }
 0x422   : > { %1090 = vadd.xlane.f32.xlu1 %v1089_v60  ;;  %3139 = vpow2.f32 %v1254_v5  ;;  %v2210_v5 = vld [vmem:[%s3723_s20 + $0x18] sm:$0xff] }
 0x423   : > { %v1608_v8 = vmul.f32 1.442695, %v1607_v6 }
 0x424   : > { %v1773_v61 = vpop.xlane.xlu1 %1772 }
 0x425   : > { %3141 = vpow2.f32 %v1608_v8  ;;  %v1774_v10 = vsub.f32 %v1770_v32, %v1773_v61 }
 0x427   : > { %v1775_v12 = vmul.f32 1.442695, %v1774_v10 }
 0x428   : > { %v928_v62 = vpop.permute.xlu1 %927  ;;  %v1940_v7 = vpop.xlane.xlu0 %1939 }
 0x429   : > { %2910 = vmatpush3.msra.mxu1 %v928_v62  ;;  %v1941_v9 = vsub.f32 %v1937_v37, %v1940_v7  ;;  %v2207_v62 = vld [vmem:[%s3723_s20] sm:$0xff]  ;;  %v3053_v7 = vpack.c.bf16 %v2210_v5, %v2209_v4 }
 0x42a   : > { %2919 = vmatprep.subr.mxu1 %v3215_v38 }
 0x42b   : > { %v3519_v63 = vpop.eup %3137  ;;  %v1942_v11 = vmul.f32 1.442695, %v1941_v9 }
 0x42c   : > { %v1423_v0 = vsel %vm835_vm3, %v3519_v63, 0.0  ;;  %v3140_v13 = vpop.eup %3139 }
 0x42d   : > { %1424 = vadd.xlane.f32.xlu1 %v1423_v0  ;;  %3143 = vpow2.f32 %v1942_v11 }
 0x42e   : > { %3145 = vpow2.f32 %v1775_v12 }
 0x42f   : > { %v3142_v14 = vpop.eup %3141 }
 0x430   : > { %v1610_v16 = vsel %vm835_vm3, %v3142_v14, 0.0 }
 0x437   : > { %1094 = vrot.lane.b32.xlu0 %v3432_v42, %s3227_s19  ;;  %v1256_v42 = vsel %vm835_vm3, %v3140_v13, 0.0  ;;  %v3529_v17 = vpop.eup %3143 }
 0x438   : > { %v1944_v20 = vsel %vm835_vm3, %v3529_v17, 0.0  ;;  %v3146_v21 = vpop.eup %3145 }
 0x439   : > { %v1777_v22 = vsel %vm835_vm3, %v3146_v21, 0.0 }
 0x43e   : > { %1782 = vrot.lane.b32.xlu1 %v3440_v43, %s3227_s19 }
 0x456   : > { %1257 = vadd.xlane.f32.xlu0 %v1256_v42 }
 0x459   : > { %v2107_v15 = vpop.xlane.xlu1 %2106 }
 0x45a   : > { %v2108_v18 = vsub.f32 %v2104_v45, %v2107_v15  ;;  %1611 = vadd.xlane.f32.xlu0 %v1610_v16 }
 0x45c   : > { %v2109_v19 = vmul.f32 1.442695, %v2108_v18 }
 0x45d   : > { %v1262_v25 = vpop.permute.xlu1 %1261 }
 0x45e   : > { %3147 = vpow2.f32 %v2109_v19  ;;  %1945 = vadd.xlane.f32.xlu0 %v1944_v20 }
 0x461   : > { %v1429_v26 = vpop.permute.xlu1 %1428 }
 0x462   : > { %1778 = vadd.xlane.f32.xlu1 %v1777_v22 }
 0x465   : > { %v1616_v27 = vpop.permute.xlu1 %1615 }
 0x468   : > { %v3534_v23 = vpop.eup %3147 }
 0x469   : > { %v2111_v24 = vsel %vm835_vm3, %v3534_v23, 0.0 }
 0x46a   : > { %2112 = vadd.xlane.f32.xlu0 %v2111_v24 }
 0x473   : > { %2116 = vrot.lane.b32.xlu1 %v3440_v43, %s3226_s30  ;;  %s3725_s30 = sld [smem:[#allocation11_spill]] (!%p2814_p5) }
 0x480   : > { %1949 = vrot.lane.b32.xlu0 %v3440_v43, %s3225_s17 }
 0x4ae   : > { %v924_v28 = vpop.xlane.xlu0 %923 }
 0x4af   : > { %3149 = vrcp.f32 %v924_v28  ;;  %v1091_v29 = vpop.xlane.xlu1 %1090  ;;  %v2805_v28 = vld [vmem:[%s3724_s26] ss:$0 sm:$0xff] }
 0x4b0   : > { %3151 = vrcp.f32 %v1091_v29 }
 0x4b2   : > { %v1095_v33 = vpop.permute.xlu0 %1094 }
 0x4b9   : > { %v3150_v30 = vpop.eup %3149 }
 0x4ba   : > { %v926_v31 = vmul.f32 %v3150_v30, %v3134_v56  ;;  %v3152_v32 = vpop.eup %3151  ;;  %v1425_v43 = vpop.xlane.xlu1 %1424 }
 0x4bb   : > { %v1093_v34 = vmul.f32 %v3152_v32, %v3513_v58 }
 0x4bc   : > { %2912 = vmatmul.mubr.msk.f32.vlgmr.msra.gmra.mrb[4].mxu1 %vm835_vm3, %v926_v31 }
 0x4bd   : > { %2920 = vmatpush3.msra.mxu1 %v1095_v33  ;;  %2921 = vmatprep.mubr.msk.f32.mxu1 %vm3216_vm2, %v3215_v38 }
 0x4be   : > { %2929 = vmatprep.subr.mxu1 %v3215_v38  ;;  %v1783_v37 = vpop.permute.xlu1 %1782 }
 0x4c0   : > { %2922 = vmatmul.mubr.msk.f32.vlgmr.msra.gmra.mrb[6].mxu1 %vm835_vm3, %v1093_v34 }
 0x4c1   : > { %2930 = vmatpush3.msra.mxu1 %v1262_v25  ;;  %2931 = vmatprep.mubr.msk.f32.mxu1 %vm3216_vm2, %v3215_v38 }
 0x4c2   : > { %2939 = vmatprep.subr.mxu1 %v3215_v38 }
 0x4e3   : > { %v1258_v35 = vpop.xlane.xlu0 %1257 }
 0x4e4   : > { %3153 = vrcp.f32 %v1258_v35 }
 0x4e5   : > { %3155 = vrcp.f32 %v1425_v43 }
 0x4e7   : > { %v1612_v36 = vpop.xlane.xlu0 %1611 }
 0x4e8   : > { %3157 = vrcp.f32 %v1612_v36 }
 0x4eb   : > { %v1946_v41 = vpop.xlane.xlu0 %1945 }
 0x4ee   : > { %v3154_v39 = vpop.eup %3153 }
 0x4ef   : > { %v1260_v40 = vmul.f32 %v3154_v39, %v3140_v13  ;;  %v1779_v44 = vpop.xlane.xlu1 %1778  ;;  %v3156_v45 = vpop.eup %3155 }
 0x4f0   : > { %3159 = vrcp.f32 %v1779_v44  ;;  %v1427_v46 = vmul.f32 %v3156_v45, %v3519_v63  ;;  %v2208_v63 = vld [vmem:[%s3723_s20 + $0x8] sm:$0xff] }
 0x4f1   : > { %2932 = vmatmul.mubr.msk.f32.vlgmr.msra.gmra.mrb[8].mxu1 %vm835_vm3, %v1260_v40  ;;  %3161 = vrcp.f32 %v1946_v41  ;;  %v3049_v1 = vpack.c.bf16 %v2208_v63, %v2207_v62  ;;  %v2809_v62 = vld [vmem:[%s663_s18] ss:$0 sm:$0xff] }
 0x4f2   : > { %2940 = vmatpush3.msra.mxu1 %v1429_v26  ;;  %2941 = vmatprep.mubr.msk.f32.mxu1 %vm3216_vm2, %v3215_v38  ;;  %v3158_v47 = vpop.eup %3157 }
 0x4f3   : > { %2949 = vmatprep.subr.mxu1 %v3215_v38  ;;  %v1614_v48 = vmul.f32 %v3158_v47, %v3142_v14  ;;  %v2117_v55 = vpop.permute.xlu1 %2116  ;;  %v2345_v47 = vld [vmem:[%s3370_s4] sm:$0xff] }
 0x4f5   : > { %2942 = vmatmul.mubr.msk.f32.vlgmr.msra.gmra.mrb[10].mxu1 %vm835_vm3, %v1427_v46 }
 0x4f6   : > { %2950 = vmatpush3.msra.mxu1 %v1616_v27  ;;  %2951 = vmatprep.mubr.msk.f32.mxu1 %vm3216_vm2, %v3215_v38 }
 0x4f7   : > { %v2113_v49 = vpop.xlane.xlu0 %2112  ;;  %2959 = vmatprep.subr.mxu1 %v3215_v38 }
 0x4f8   : > { %3163 = vrcp.f32 %v2113_v49 }
 0x4f9   : > { %2952 = vmatmul.mubr.msk.f32.vlgmr.msra.gmra.mrb[12].mxu1 %vm835_vm3, %v1614_v48  ;;  %v2346_v48 = vld [vmem:[%s3370_s4 + $0x8] sm:$0xff] }
 0x4fa   : > { %v3160_v50 = vpop.eup %3159  ;;  %2960 = vmatpush3.msra.mxu1 %v1783_v37  ;;  %2961 = vmatprep.mubr.msk.f32.mxu1 %vm3216_vm2, %v3215_v38  ;;  %v3057_v49 = vpack.c.bf16 %v2346_v48, %v2345_v47 }
 0x4fb   : > { %v1781_v51 = vmul.f32 %v3160_v50, %v3146_v21  ;;  %v1950_v52 = vpop.permute.xlu0 %1949  ;;  %2969 = vmatprep.subr.mxu1 %v3215_v38  ;;  %v3162_v53 = vpop.eup %3161  ;;  %v2347_v50 = vld [vmem:[%s3370_s4 + $0x10] sm:$0xff] }
 0x4fc   : > { %v1948_v54 = vmul.f32 %v3162_v53, %v3529_v17 }
 0x4fd   : > { %2962 = vmatmul.mubr.msk.f32.vlgmr.msra.gmra.mrb[14].mxu1 %vm835_vm3, %v1781_v51  ;;  %v2348_v51 = vld [vmem:[%s3370_s4 + $0x18] sm:$0xff] }
 0x4fe   : > { %2970 = vmatpush3.msra.mxu1 %v1950_v52  ;;  %2971 = vmatprep.mubr.msk.f32.mxu1 %vm3216_vm2, %v3215_v38  ;;  %v3061_v52 = vpack.c.bf16 %v2348_v51, %v2347_v50 }
 0x4ff   : > { %2979 = vmatprep.subr.mxu1 %v3215_v38 }
 0x501   : > { %2972 = vmatmul.mubr.msk.f32.vlgmr.msra.gmra.mrb[16].mxu1 %vm835_vm3, %v1948_v54 }
 0x502   : > { %v3164_v56 = vpop.eup %3163  ;;  %2980 = vmatpush3.msra.mxu1 %v2117_v55  ;;  %2981 = vmatprep.mubr.msk.f32.mxu1 %vm3216_vm2, %v3215_v38 }
 0x503   : > { %v2115_v57 = vmul.f32 %v3164_v56, %v3534_v23  ;;  %3050 = vmatprep.subr.bf16.mxu1 %v3049_v1 }
 0x505   : > { %2982 = vmatmul.mubr.msk.f32.vlgmr.msra.gmra.mrb[18].mxu1 %vm835_vm3, %v2115_v57 }
 0x506   : > { %3052 = vmatpush3.bf16.msra.mxu1 %v3049_v1 }
 0x507   : > { %3054 = vmatprep.subr.bf16.mxu1 %v3053_v7 }
 0x50a   : > { %3056 = vmatpush3.bf16.msra.mxu1 %v3053_v7  ;;  %v2456_v7 = vld [vmem:[%s3380_s27 + $0x8] sm:$0xff] }
 0x50b   : > { %3058 = vmatprep.subr.bf16.mxu1 %v3057_v49 }
 0x58f   : > { %v999_v58 = vpop.f32.mrb[4].mxu1 }
 0x590   : > { %v2913_v59 = vpop.f32.mrb[5].mxu1 }
 0x593   : > { %v1166_v60 = vpop.f32.mrb[6].mxu1 }
 0x594   : > { %1505 = vrot.lane.b32.xlu0 %v1166_v60, %s3228_s16  ;;  %v2923_v61 = vpop.f32.mrb[7].mxu1  ;;  %v2808_v60 = vld [vmem:[%s660_s14] ss:$0 sm:$0xff] }
 0x5c4   : > { %v1333_v0 = vpop.f32.mrb[8].mxu1 }
 0x5c5   : > { %1509 = vrot.lane.b32.xlu1 %v1333_v0, %s3229_s21  ;;  %v2933_v38 = vpop.f32.mrb[9].mxu1 }
 0x5c8   : > { %v1500_v6 = vpop.f32.mrb[10].mxu1 }
 0x5c9   : > { %1513 = vrot.lane.b32.xlu1 %v1500_v6, %s3230_s25  ;;  %v2943_v8 = vpop.f32.mrb[11].mxu1  ;;  %v2455_v6 = vld [vmem:[%s3380_s27] sm:$0xff] }
 0x5ca   : > { %v3065_v8 = vpack.c.bf16 %v2456_v7, %v2455_v6 }
 0x5cc   : > { %v1687_v9 = vpop.f32.mrb[12].mxu1  ;;  %3066 = vmatprep.subr.bf16.mxu0 %v3065_v8 }
 0x5cd   : > { %v2953_v10 = vpop.f32.mrb[13].mxu1  ;;  %3068 = vmatpush3.bf16.msra.mxu0 %v3065_v8 }
 0x5ce   : > { %v2458_v10 = vld [vmem:[%s3380_s27 + $0x18] sm:$0xff] }
 0x5d0   : > { %v1854_v11 = vpop.f32.mrb[14].mxu1 }
 0x5d1   : > { %2193 = vrot.lane.b32.xlu0 %v1854_v11, %s3228_s16  ;;  %v2963_v12 = vpop.f32.mrb[15].mxu1 }
 0x5d2   : > { %v2459_v12 = vld [vmem:[%s3380_s27 + $0x20] sm:$0xff] }
 0x5d4   : > { %v2021_v13 = vpop.f32.mrb[16].mxu1 }
 0x5d5   : > { %2197 = vrot.lane.b32.xlu0 %v2021_v13, %s3229_s21  ;;  %v2973_v42 = vpop.f32.mrb[17].mxu1  ;;  %v2460_v13 = vld [vmem:[%s3380_s27 + $0x28] sm:$0xff]  ;;  %s3726_s21 = sld [smem:[#allocation12_spill]] (!%p2814_p5) }
 0x5d6   : > { %v3073_v42 = vpack.c.bf16 %v2460_v13, %v2459_v12 }
 0x5d8   : > { %v2188_v14 = vpop.f32.mrb[18].mxu1 }
 0x5d9   : > { %2201 = vrot.lane.b32.xlu1 %v2188_v14, %s3230_s25  ;;  %v2983_v15 = vpop.f32.mrb[19].mxu1  ;;  %v2461_v14 = vld [vmem:[%s3380_s27 + $0x30] sm:$0xff] }
 0x5da   : > { %v2462_v15 = vld [vmem:[%s3380_s27 + $0x38] sm:$0xff] }
 0x606   : > { %v1506_v16 = vpop.permute.xlu0 %1505 }
 0x607   : > { %v1516_v18 = vsel %vm835_vm3, %v999_v58, %v1506_v16  ;;  %v3077_v16 = vpack.c.bf16 %v2462_v15, %v2461_v14  ;;  %v2815_v14 = vld [vmem:[%s3725_s30] ss:$0 sm:$0xff] (!%p2814_p5) }
 0x637   : > { %v1510_v17 = vpop.permute.xlu1 %1509 }
 0x638   : > { %v1518_v19 = vsel %vm1517_vm5, %v1516_v18, %v1510_v17  ;;  %v2463_v17 = vld [vmem:[%s3380_s27 + $0x40] sm:$0xff]  ;;  %v2464_v18 = vld [vmem:[%s3380_s27 + $0x48] sm:$0xff] }
 0x63b   : > { %v1514_v20 = vpop.permute.xlu1 %1513 }
 0x63c   : > { %v1520_v21 = vsel %vm1519_vm6, %v1518_v19, %v1514_v20  ;;  %v2465_v19 = vld [vmem:[%s3380_s27 + $0x50] sm:$0xff]  ;;  %v3081_v20 = vpack.c.bf16 %v2464_v18, %v2463_v17 }
 0x63d   : > { %2992 = vmatprep.mubr.msk.f32.mxu1 %vm696_vm1, %v1520_v21  ;;  %v2466_v21 = vld [vmem:[%s3380_s27 + $0x58] sm:$0xff] }
 0x643   : > { %v2194_v22 = vpop.permute.xlu0 %2193 }
 0x644   : > { %v2204_v24 = vsel %vm835_vm3, %v1687_v9, %v2194_v22  ;;  %v2457_v9 = vld [vmem:[%s3380_s27 + $0x10] sm:$0xff]  ;;  %v3085_v22 = vpack.c.bf16 %v2466_v21, %v2465_v19 }
 0x645   : > { %v3069_v11 = vpack.c.bf16 %v2458_v10, %v2457_v9 }
 0x647   : > { %v2198_v23 = vpop.permute.xlu0 %2197  ;;  %3070 = vmatprep.subr.bf16.mxu0 %v3069_v11 }
 0x648   : > { %v2205_v25 = vsel %vm1517_vm5, %v2204_v24, %v2198_v23  ;;  %3072 = vmatpush3.bf16.msra.mxu0 %v3069_v11  ;;  %v2467_v23 = vld [vmem:[%s3380_s27 + $0x60] sm:$0xff]  ;;  %v2468_v24 = vld [vmem:[%s3380_s27 + $0x68] sm:$0xff] }
 0x649   : > { %3074 = vmatprep.subr.bf16.mxu0 %v3073_v42 }
 0x64b   : > { %v2202_v26 = vpop.permute.xlu1 %2201 }
 0x64c   : > { %v2206_v27 = vsel %vm1519_vm6, %v2205_v25, %v2202_v26  ;;  %3076 = vmatpush3.bf16.msra.mxu0 %v3073_v42  ;;  %v3089_v25 = vpack.c.bf16 %v2468_v24, %v2467_v23  ;;  %v2469_v26 = vld [vmem:[%s3380_s27 + $0x70] sm:$0xff] }
 0x64d   : > { %2993 = vmatmul.mubr.msk.f32.vlgmr.msra.gmra.mrb[20].mxu1 %vm696_vm1, %v2206_v27  ;;  %3078 = vmatprep.subr.bf16.mxu0 %v3077_v16  ;;  %v2470_v27 = vld [vmem:[%s3380_s27 + $0x78] sm:$0xff] }
 0x64e   : > { %3060 = vmatpush3.bf16.msra.mxu1 %v3057_v49 }
 0x64f   : > { %3062 = vmatprep.subr.bf16.mxu1 %v3061_v52 }
 0x650   : > { %3080 = vmatpush3.bf16.msra.mxu0 %v3077_v16  ;;  %v2816_v16 = vld [vmem:[%s3726_s21] ss:$0 sm:$0xff] (!%p2814_p5) }
 0x651   : > { %3082 = vmatprep.subr.bf16.mxu0 %v3081_v20 }
 0x652   : > { %3064 = vmatpush3.bf16.msra.mxu1 %v3061_v52 }
 0x654   : > { %3084 = vmatpush3.bf16.msra.mxu0 %v3081_v20 }
 0x655   : > { %3086 = vmatprep.subr.bf16.mxu0 %v3085_v22 }
 0x658   : > { %3088 = vmatpush3.bf16.msra.mxu0 %v3085_v22 }
 0x659   : > { %3090 = vmatprep.subr.bf16.mxu0 %v3089_v25 }
 0x65c   : > { %3092 = vmatpush3.bf16.msra.mxu0 %v3089_v25 }
 0x720   : > { %v2994_v29 = vpop.f32.mrb[20].mxu1 }
 0x721   : > { %v2296_v30 = vadd.f32 %v2994_v29, %v2805_v28  ;;  %v2290_v31 = vpop.f32.mrb[21].mxu1  ;;  %v2810_v29 = vld [vmem:[%s671_s6] ss:$0 sm:$0xff] }
 0x722   : > { %v2291_v32 = vadd.f32 %v2805_v28, %v2290_v31  ;;  %v3093_v28 = vpack.c.bf16 %v2470_v27, %v2469_v26 }
 0x723   : > { %v3590_v33 = vadd.f32 %v2296_v30, %v3395_v3 }
 0x724   : > { %v3593_v34 = vadd.f32 %v2291_v32, %v3393_v2  ;;  %3094 = vmatprep.subr.bf16.mxu0 %v3093_v28 }
 0x725   : > { %v2306_v43 = vsel %vm696_vm1, %v3590_v33, 0.0  ;;  %3096 = vmatpush3.bf16.msra.mxu0 %v3093_v28 }
 0x726   : > { %2307 = vadd.xlane.f32.xlu1 %v2306_v43  ;;  %v2303_v35 = vsel %vm696_vm1, %v3593_v34, 0.0 }
 0x727   : > { %2304 = vadd.xlane.f32.xlu0 %v2303_v35 }
 0x7b3   : > { %v2308_v36 = vpop.xlane.xlu1 %2307 }
 0x7b4   : > { %v2310_v37 = vmul.f32 0.03125, %v2308_v36  ;;  %v2305_v39 = vpop.xlane.xlu0 %2304 }
 0x7b5   : > { %v2309_v3 = vmul.f32 0.03125, %v2305_v39 }
 0x7b6   : > { %v2312_v40 = vsub.f32 %v3590_v33, %v2310_v37 }
 0x7b7   : > { %v2311_v2 = vsub.f32 %v3593_v34, %v2309_v3 }
 0x7b8   : > { %v2314_v45 = vmul.f32 %v2312_v40, %v2312_v40 }
 0x7b9   : > { %v2313_v41 = vmul.f32 %v2311_v2, %v2311_v2 }
 0x7ba   : > { %v2318_v46 = vsel %vm696_vm1, %v2314_v45, 0.0 }
 0x7bb   : > { %v2315_v44 = vsel %vm696_vm1, %v2313_v41, 0.0 }
 0x7bc   : > { %2316 = vadd.xlane.f32.xlu0 %v2315_v44 }
 0x7c0   : > { %2319 = vadd.xlane.f32.xlu0 %v2318_v46 }
 0x849   : > { %v2317_v53 = vpop.xlane.xlu0 %2316 }
 0x84a   : > { %v2321_v54 = vmul.f32 0.03125, %v2317_v53 }
 0x84c   : > { %v2323_v55 = vadd.f32 1e-12, %v2321_v54  ;;  %v2813_v54 = vld [vmem:[%s679_s0] ss:$0 sm:$0xff] }
 0x84d   : > { %v2320_v56 = vpop.xlane.xlu0 %2319 }
 0x84e   : > { %3165 = vrsqrt.f32 %v2323_v55  ;;  %v2322_v57 = vmul.f32 0.03125, %v2320_v56 }
 0x850   : > { %v2324_v58 = vadd.f32 1e-12, %v2322_v57 }
 0x852   : > { %3167 = vrsqrt.f32 %v2324_v58 }
 0x858   : > { %v3166_v59 = vpop.eup %3165 }
 0x859   : > { %v2327_v61 = vmul.f32 %v3166_v59, %v2311_v2 }
 0x85b   : > { %v2335_v63 = vmul.f32 %v2808_v60, %v2327_v61 }
 0x85c   : > { %v3168_v0 = vpop.eup %3167 }
 0x85d   : > { %v2328_v1 = vmul.f32 %v3168_v0, %v2312_v40  ;;  %v2343_v38 = vadd.f32 %v2809_v62, %v2335_v63 }
 0x85f   : > { %v2336_v4 = vmul.f32 %v2808_v60, %v2328_v1  ;;  %3003 = vmatprep.mubr.msk.f32.mxu1 %vm696_vm1, %v2343_v38 }
 0x861   : > { %v2344_v5 = vadd.f32 %v2809_v62, %v2336_v4 }
 0x863   : > { %3004 = vmatmul.mubr.msk.f32.vlgmr.msra.gmra.mrb[22].mxu1 %vm696_vm1, %v2344_v5 }
 0x936   : > { %v3005_v30 = vpop.f32.mrb[22].mxu1 }
 0x937   : > { %v2434_v31 = vadd.f32 %v3005_v30, %v2810_v29  ;;  %v2428_v32 = vpop.f32.mrb[23].mxu1 }
 0x938   : > { %v2429_v43 = vadd.f32 %v2810_v29, %v2428_v32 }
 0x939   : > { %v2438_v35 = vmul.f32 %v2434_v31, %v2434_v31 }
 0x93a   : > { %v2437_v36 = vmul.f32 %v2429_v43, %v2429_v43 }
 0x93b   : > { %v2440_v37 = vmul.f32 %v2438_v35, %v2434_v31 }
 0x93c   : > { %v2439_v39 = vmul.f32 %v2437_v36, %v2429_v43 }
 0x93d   : > { %v2442_v3 = vmul.f32 0.044715, %v2440_v37 }
 0x93e   : > { %v2441_v40 = vmul.f32 0.044715, %v2439_v39 }
 0x93f   : > { %v2444_v2 = vadd.f32 %v2442_v3, %v2434_v31 }
 0x940   : > { %v2443_v41 = vadd.f32 %v2441_v40, %v2429_v43 }
 0x941   : > { %v2446_v44 = vmul.f32 0.7978846, %v2444_v2 }
 0x942   : > { %v2445_v45 = vmul.f32 0.7978846, %v2443_v41 }
 0x943   : > { %3169 = vtanh.f32 %v2446_v44 }
 0x944   : > { %3171 = vtanh.f32 %v2445_v45 }
 0x94d   : > { %v3170_v46 = vpop.eup %3169 }
 0x94e   : > { %v3172_v47 = vpop.eup %3171  ;;  %v2450_v48 = vadd.f32 1.0, %v3170_v46 }
 0x94f   : > { %v2449_v49 = vadd.f32 1.0, %v3172_v47 }
 0x950   : > { %v2452_v50 = vmul.f32 0.5, %v2450_v48 }
 0x951   : > { %v2451_v51 = vmul.f32 0.5, %v2449_v49 }
 0x952   : > { %v2454_v53 = vmul.f32 %v2452_v50, %v2434_v31 }
 0x953   : > { %v2453_v52 = vmul.f32 %v2451_v51, %v2429_v43 }
 0x955   : > { %3038 = vmatprep.mubr.f32.mxu0 %v2453_v52 }
 0x956   : > { %3039 = vmatmul.mubr.f32.vlgmr.msra.gmra.mrb[14].mxu0 %v2454_v53 }
 0xa29   : > { %v3040_v55 = vpop.f32.mrb[14].mxu0  ;;  %2560 = sbr.rel (%p2814_p5) target bundleno = 2925 (0xb6d), region = 92 }
 0xa2a   : > { %v2550_v56 = vadd.f32 %v3040_v55, %v2813_v54  ;;  %v2544_v57 = vpop.f32.mrb[15].mxu0 }
 0xa2b   : > { %v2545_v58 = vadd.f32 %v2813_v54, %v2544_v57 }
 0xa2c   : > { %v2554_v59 = vadd.f32 %v2550_v56, %v3590_v33 }
 0xa2d   : > { %v2553_v60 = vadd.f32 %v2545_v58, %v3593_v34 }
 0xa2e   : > { %2556 = vst.msk [vmem:[#allocation2 + $0x8] sm:$0xff] %vm696_vm1, %v2554_v59  ;;  %v2566_v62 = vsel (!%p2814_p5), %vm696_vm1, %v2554_v59, 0.0 }
 0xa2f   : > { %2555 = vst.msk [vmem:[#allocation2] sm:$0xff] %vm696_vm1, %v2553_v60  ;;  %v2563_v61 = vsel (!%p2814_p5), %vm696_vm1, %v2553_v60, 0.0 }
 0xa30   : > { %2564 = vadd.xlane.f32.xlu0 %v2563_v61 }
 0xa34   : > { %2567 = vadd.xlane.f32.xlu0 %v2566_v62 }
 0xabd   : > { %v2565_v63 = vpop.xlane.xlu0 %2564 }
 0xabe   : > { %v2569_v0 = vmul.f32 0.03125, %v2565_v63 }
 0xac0   : > { %v2571_v1 = vsub.f32 %v2553_v60, %v2569_v0 }
 0xac1   : > { %v2568_v38 = vpop.xlane.xlu0 %2567 }
 0xac2   : > { %v2570_v33 = vmul.f32 0.03125, %v2568_v38  ;;  %v2573_v4 = vmul.f32 %v2571_v1, %v2571_v1 }
 0xac4   : > { %v2572_v34 = vsub.f32 %v2554_v59, %v2570_v33  ;;  %v2575_v5 = vsel %vm696_vm1, %v2573_v4, 0.0 }
 0xac5   : > { %2576 = vadd.xlane.f32.xlu1 %v2575_v5 }
 0xac6   : > { %v2574_v6 = vmul.f32 %v2572_v34, %v2572_v34 }
 0xac8   : > { %v2578_v7 = vsel %vm696_vm1, %v2574_v6, 0.0 }
 0xac9   : > { %2579 = vadd.xlane.f32.xlu1 %v2578_v7 }
 0xb52   : > { %v2577_v8 = vpop.xlane.xlu1 %2576 }
 0xb53   : > { %v2581_v9 = vmul.f32 0.03125, %v2577_v8 }
 0xb55   : > { %v2583_v10 = vadd.f32 1e-12, %v2581_v9 }
 0xb56   : > { %v2580_v11 = vpop.xlane.xlu1 %2579 }
 0xb57   : > { %3173 = vrsqrt.f32 %v2583_v10  ;;  %v2582_v12 = vmul.f32 0.03125, %v2580_v11 }
 0xb59   : > { %v2584_v13 = vadd.f32 1e-12, %v2582_v12 }
 0xb5b   : > { %3175 = vrsqrt.f32 %v2584_v13 }
 0xb61   : > { %v3174_v42 = vpop.eup %3173 }
 0xb62   : > { %v2587_v15 = vmul.f32 %v3174_v42, %v2571_v1 }
 0xb64   : > { %v2595_v17 = vmul.f32 %v2815_v14, %v2587_v15 }
 0xb65   : > { %v3176_v18 = vpop.eup %3175 }
 0xb66   : > { %v2603_v19 = vadd.f32 %v2816_v16, %v2595_v17  ;;  %v2588_v20 = vmul.f32 %v3176_v18, %v2572_v34 }
 0xb68   : > { %2605 = vst.msk [vmem:[#allocation3] sm:$0xff] %vm696_vm1, %v2603_v19  ;;  %v2596_v21 = vmul.f32 %v2815_v14, %v2588_v20 }
 0xb6a   : > { %v2604_v22 = vadd.f32 %v2816_v16, %v2596_v21 }
 0xb6c   : > { %2606 = vst.msk [vmem:[#allocation3 + $0x8] sm:$0xff] %vm696_vm1, %v2604_v22 }
 0xb6d PF: > { %p3101_p6 = scmp.eq.s32.totalorder %s3324_s22, 1  ;;  %s3231_s25 = smov [#allocation3]  }
 0xb6e   : > { %s2613_s24 = sshll.u32 %s3231_s25, 4  ;;  %s2614_s24 = int_to_ptr.vmem [resolvable:$true] %s2613_s24 }
 0xb6f   : > { %s3177_s15 = scalar_lea.vmem %s2614_s24, 256  ;;  %p3184_p10 = scmp.lt.s32.totalorder %s2614_s24, %s2614_s24 }
 0xb70   : > { %p3178_p7 = scmp.ne.s32.totalorder %s2614_s24, %s3177_s15  ;;  %p3185_p11 = scmp.lt.s32.totalorder %s3177_s15, %s3177_s15 }
 0xb72   : > { %p3179_p8 = pnand %p3178_p7, %p3101_p6  ;;  %p3186_p12 = por %p3185_p11, %p3184_p10 }
 0xb74   : > { %p3180_p9 = pneg %p3179_p8 }
 0xb76   : > { %p3187_p13 = pnand %p3186_p12, %p3180_p9 }
 0xb78   : > { %3190 = shalt.err (!%p3187_p13)
}
 0xb79   : > { %s3727_s28 = sld [smem:[#allocation13_spill]] }
 0xb7f   : > { %s3191_s4 = scalar_lea.hbm %s3727_s28, 256 }
 0xb80   : > { %p3192_p0 = scmp.ne.s32.totalorder %s3727_s28, %s3191_s4  ;;  %p3197_p3 = scmp.lt.u32.totalorder %s3191_s4, %s3727_s28 }
 0xb82   : > { %p3193_p1 = pnand %p3192_p0, %p3101_p6 }
 0xb84   : > { %p3194_p2 = pneg %p3193_p1 }
 0xb86   : > { %p3199_p4 = pnand %p3197_p3, %p3194_p2 }
 0xb88   : > { %3202 = shalt.err (!%p3199_p4)
}
 0xb89   : > { %s3232_s27 = smov 128  }
 0xb8a   : > { %3098 = dma.vmem_to_hbm [thread:$0]  (%p3101_p6), %s2614_s24, 256, %s3727_s28, [#allocation4], %s3232_s27, %s3232_s27, %s3228_s16  }
 0xb8b   : > { %3208 = dma.done.wait (%p3101_p6), [#allocation4], 256  }
 0xb8c   : > { %3210 = vsyncadd (%p3101_p6), [#allocation4], 4294967040 }
 0xb8d PF: > { %s3728_s30 = sld [smem:[#allocation6_spill]] }
 0xb93   : > { %s27_s21 = sadd.s32 1, %s3728_s30  }
 0xb94   : > { %p24_p5 = scmp.ge.s32.totalorder %s27_s21, 4  }
 0xb96   :  { %26 = sbr.rel (!%p24_p5) target bundleno = 8 (0x8), region = 152 }
 0xb9d   :  { %2629 = vsyncpa [#allocation4], 1 }
 0xb9e   :  { %2631 = vsyncpa [#allocation4 + $0x1], 1 }

</bundles_post_ra>
